<compile_context>
chip_gen: v7x
topology: tpu7x:2x2x1
jax: 0.10.0
libtpu: 0.0.40
codegen_flags: <defaults>
</compile_context>

<pallas_src>
import jax
import jax.numpy as jnp
from jax import lax
from jax.experimental import pallas as pl
from jax.experimental.pallas import tpu as pltpu


def _round_up(x, m):
    return ((x + m - 1) // m) * m


# ----------------------------------------------------------------------------
# Pallas kernel: full multi-layer, multi-timestep GRU in one pallas_call.
# ----------------------------------------------------------------------------
def make_gru_kernel(n_layers, seq_len, batch_p, width_p, gate_p, hid_dim):
    L, T, Bp, P, G, H = n_layers, seq_len, batch_p, width_p, gate_p, hid_dim
    W = min(P, G)          # "core" width where the hidden-state update happens

    def kernel(x_ref, wih_ref, whh_ref, bih_ref, bhn_ref,
               out_ref, h_ref, seq_ref, gi_ref):
        # x_ref   : (T*Bp, P)   time-major padded input (row = t*Bp + b), f32
        # wih_ref : (L, P, G)   gate-compact W_ih^T per layer, bf16
        # whh_ref : (L, P, G)   gate-compact W_hh^T per layer, bf16
        # bih_ref : (L, 1, G)   b_ih + [b_hh_r, b_hh_z, 0]  (pre-folded), f32
        # bhn_ref : (L, 1, G)   b_hh_n at lanes [2H, 3H), else 0, f32
        # out_ref : (T*Bp, P)   last-layer output sequence, f32
        # h_ref   : (Bp, P)     last-layer final hidden, f32
        # seq_ref : (T*Bp, P)   scratch: inter-layer sequence buffer
        # gi_ref  : (T*Bp, G)   scratch: hoisted input projection

        # Hoisted constants (built once, reused across layers and timesteps).
        keep = lax.broadcasted_iota(jnp.int32, (Bp, W), 1) < H
        zeros_g = jnp.zeros((Bp, G), jnp.float32)
        zeros_p = jnp.zeros((Bp, P), jnp.float32)

        for l in range(L):                      # static, tiny layer count
            src = x_ref if l == 0 else seq_ref
            dst = out_ref if l == L - 1 else seq_ref

            # Per-layer weights / bias loaded ONCE (resident across all T
            # recurrent steps; only 8 vregs for the bf16 (128,128) whh slab).
            wih_l = wih_ref[l]                                  # (P, G) bf16
            whh_l = whh_ref[l]                                  # (P, G) bf16
            bhn_b = jnp.broadcast_to(bhn_ref[l], (Bp, G))       # hoisted bcast

            # Hoist the input projection for ALL timesteps out of the serial
            # recurrence: one big MXU matmul per layer.  The full read of
            # `src` happens here, before any store to `dst`, so src==dst
            # (middle layers) is safe.
            gi_ref[...] = (
                jnp.dot(src[...].astype(jnp.bfloat16), wih_l,
                        preferred_element_type=jnp.float32)
                + bih_ref[l])

            def cell(gi_t, gh, h):
                # Gate layout (compact): r=[0,H) z=[H,2H) n=[2H,3H) within G.
                act = jax.nn.sigmoid(gi_t + gh)          # r,z valid at [0,2H)
                r_n = pltpu.roll(act, 2 * H, axis=1)     # r -> lanes [2H,3H)
                nf = jnp.tanh(gi_t + r_n * (gh + bhn_b))  # n valid at [2H,3H)
                n_h = pltpu.roll(nf, G - 2 * H, axis=1)[:, :W]   # n -> [0,H)
                z_h = pltpu.roll(act, G - H, axis=1)[:, :W]      # z -> [0,H)
                # h' = (1-z)*n + z*h  ==  n + z*(h - n)   (one fewer VPU op)
                h_new = jnp.where(keep, n_h + z_h * (h[:, :W] - n_h), 0.0)
                if W < P:
                    h_new = jnp.concatenate(
                        [h_new, jnp.zeros((Bp, P - W), jnp.float32)], axis=1)
                return h_new

            # Peel t=0: h0 == 0, so the recurrent matmul is skipped entirely.
            h1 = cell(gi_ref[pl.ds(0, Bp), :], zeros_g, zeros_p)
            dst[pl.ds(0, Bp), :] = h1

            def step(t, h):
                row = pl.multiple_of(t * Bp, 8)
                gi_t = gi_ref[pl.ds(row, Bp), :]                  # (Bp, G)
                gh = jnp.dot(h.astype(jnp.bfloat16), whh_l,
                             preferred_element_type=jnp.float32)  # (Bp, G)
                h_new = cell(gi_t, gh, h)
                dst[pl.ds(row, Bp), :] = h_new
                return h_new

            # Short fixed trip count: fully unroll for LLO scheduler overlap.
            h_last = lax.fori_loop(1, T, step, h1, unroll=True)
            if l == L - 1:
                h_ref[...] = h_last

    return kernel


# ----------------------------------------------------------------------------
# Parameters (deterministic, synthetic; same layout as torch.nn.GRU)
# ----------------------------------------------------------------------------
def init_gru_params(key, in_dim, hid_dim, n_layers):
    params = []
    keys = jax.random.split(key, n_layers * 4)
    scale = 1.0 / float(hid_dim) ** 0.5
    for l in range(n_layers):
        din = in_dim if l == 0 else hid_dim
        k0, k1, k2, k3 = keys[4 * l:4 * l + 4]
        w_ih = scale * jax.random.uniform(k0, (3 * hid_dim, din),
                                          minval=-1.0, maxval=1.0)
        w_hh = scale * jax.random.uniform(k1, (3 * hid_dim, hid_dim),
                                          minval=-1.0, maxval=1.0)
        b_ih = scale * jax.random.uniform(k2, (3 * hid_dim,),
                                          minval=-1.0, maxval=1.0)
        b_hh = scale * jax.random.uniform(k3, (3 * hid_dim,),
                                          minval=-1.0, maxval=1.0)
        params.append((w_ih.astype(jnp.float32), w_hh.astype(jnp.float32),
                       b_ih.astype(jnp.float32), b_hh.astype(jnp.float32)))
    return params


def pack_gru_weights(params, in_dim, hid_dim):
    """Pack/transpose/pad weights ONCE (hoisted out of the per-call path).

    Compact gate layout: gate g (order r,z,n, as in torch) occupies lanes
    [g*H, (g+1)*H) of a G = round_up(3H,128)-wide block.  b_hh[r], b_hh[z]
    are folded into the input-projection bias; only b_hh[n] stays separate
    (it must sit inside the r-gated term).  Weights stored in bf16 (MXU
    operands), biases in f32.
    """
    L = len(params)
    H = hid_dim
    P = _round_up(max(in_dim, hid_dim), 128)
    G = _round_up(3 * H, 128)
    wih = jnp.zeros((L, P, G), jnp.float32)
    whh = jnp.zeros((L, P, G), jnp.float32)
    bih = jnp.zeros((L, 1, G), jnp.float32)
    bhn = jnp.zeros((L, 1, G), jnp.float32)
    for l, (w_ih, w_hh, b_ih, b_hh) in enumerate(params):
        din = in_dim if l == 0 else hid_dim
        wih = wih.at[l, :din, :3 * H].set(w_ih.T)
        whh = whh.at[l, :H, :3 * H].set(w_hh.T)
        b_comb = b_ih + jnp.concatenate(
            [b_hh[:2 * H], jnp.zeros((H,), jnp.float32)])
        bih = bih.at[l, 0, :3 * H].set(b_comb)
        bhn = bhn.at[l, 0, 2 * H:3 * H].set(b_hh[2 * H:])
    return dict(wih=wih.astype(jnp.bfloat16), whh=whh.astype(jnp.bfloat16),
                bih=bih, bhn=bhn, P=P, G=G, H=H, L=L, in_dim=in_dim)


# ----------------------------------------------------------------------------
# Wrapper (mirrors GRULayer.forward)
# ----------------------------------------------------------------------------
def gru_layer_forward(x, packed):
    """x: (batch, seq, in_dim), batch_first like nn.GRU(batch_first=True).

    Returns (out[-1, :, :], h[-1, :, :]) exactly like GRULayer.forward:
      out[-1,:,:] -> (seq, hid_dim)   (last batch element, all timesteps)
      h[-1,:,:]   -> (batch, hid_dim) (last layer's final hidden, all batch)
    """
    B, T, in_dim = x.shape
    P, G, H, L = packed["P"], packed["G"], packed["H"], packed["L"]
    Bp = _round_up(max(B, 8), 8)

    x_t = jnp.transpose(jnp.asarray(x, jnp.float32), (1, 0, 2))   # (T, B, in)
    x_pad = jnp.zeros((T, Bp, P), jnp.float32).at[:, :B, :in_dim].set(x_t)
    x_pad = x_pad.reshape(T * Bp, P)

    kernel = make_gru_kernel(L, T, Bp, P, G, H)
    out_full, h_full = pl.pallas_call(
        kernel,
        out_shape=(jax.ShapeDtypeStruct((T * Bp, P), jnp.float32),
                   jax.ShapeDtypeStruct((Bp, P), jnp.float32)),
        in_specs=[pl.BlockSpec(memory_space=pltpu.MemorySpace.VMEM)] * 5,
        out_specs=(pl.BlockSpec(memory_space=pltpu.MemorySpace.VMEM),
                   pl.BlockSpec(memory_space=pltpu.MemorySpace.VMEM)),
        scratch_shapes=[pltpu.VMEM((T * Bp, P), jnp.float32),      # seq buffer
                        pltpu.VMEM((T * Bp, G), jnp.float32)],     # hoisted gi
    )(x_pad, packed["wih"], packed["whh"], packed["bih"], packed["bhn"])

    out_seq = out_full.reshape(T, Bp, P)[:, :B, :H]    # (T, B, H)
    out_last = out_seq[:, B - 1, :]                    # == out[-1, :, :]
    h_last = h_full[:B, :H]                            # == h[-1, :, :]
    return out_last, h_last


# ----------------------------------------------------------------------------
# Pure-JAX reference (mirrors torch.nn.GRU, inference, f32) for validation
# ----------------------------------------------------------------------------
def gru_layer_reference(x, params, hid_dim):
    B, T, _ = x.shape
    H = hid_dim
    inp = jnp.asarray(x, jnp.float32)
    h_final = None
    for (w_ih, w_hh, b_ih, b_hh) in params:
        h = jnp.zeros((B, H), jnp.float32)
        ys = []
        for t in range(T):
            xt = inp[:, t, :]
            gi = xt @ w_ih.T + b_ih
            gh = h @ w_hh.T + b_hh
            r = jax.nn.sigmoid(gi[:, :H] + gh[:, :H])
            z = jax.nn.sigmoid(gi[:, H:2 * H] + gh[:, H:2 * H])
            n = jnp.tanh(gi[:, 2 * H:] + r * gh[:, 2 * H:])
            h = (1.0 - z) * n + z * h
            ys.append(h)
        inp = jnp.stack(ys, axis=1)                     # (B, T, H)
        h_final = h
    out = inp                                           # (B, T, H), batch_first
    return out[-1, :, :], h_final                       # (T, H), (B, H)


# ----------------------------------------------------------------------------
if __name__ == "__main__":
    in_dim, hid_dim, n_layers, dropout = 16, 32, 2, 0.1   # dropout: inference no-op
    batch, seq = 2, 8

    key = jax.random.PRNGKey(0)
    kp, kx = jax.random.split(key)
    params = init_gru_params(kp, in_dim, hid_dim, n_layers)
    packed = pack_gru_weights(params, in_dim, hid_dim)     # once, amortized
    x = jax.random.normal(kx, (batch, seq, in_dim), dtype=jnp.float32)

    out, h = gru_layer_forward(x, packed)
    jax.block_until_ready((out, h))

    out_ref, h_ref = gru_layer_reference(x, params, hid_dim)
    assert out.shape == (seq, hid_dim) and h.shape == (batch, hid_dim)
    # Tolerance accounts for bf16 MXU operands (f32 accumulation) in the kernel
    # vs. the all-f32 reference.
    assert jnp.allclose(out, out_ref, atol=2e-2, rtol=2e-2), "out mismatch"
    assert jnp.allclose(h, h_ref, atol=2e-2, rtol=2e-2), "hidden mismatch"

    print("KERNEL_OK")
</pallas_src>

<mosaic_0001>
module attributes {stable_mosaic.version = 11 : i64} {
  func.func @kernel(%arg0: memref<64x128xf32, #tpu.memory_space<vmem>>, %arg1: memref<2x128x128xbf16, #tpu.memory_space<vmem>>, %arg2: memref<2x128x128xbf16, #tpu.memory_space<vmem>>, %arg3: memref<2x1x128xf32, #tpu.memory_space<vmem>>, %arg4: memref<2x1x128xf32, #tpu.memory_space<vmem>>, %arg5: memref<64x128xf32, #tpu.memory_space<vmem>>, %arg6: memref<8x128xf32, #tpu.memory_space<vmem>>, %arg7: memref<64x128xf32, #tpu.memory_space<vmem>>, %arg8: memref<64x128xf32, #tpu.memory_space<vmem>>) attributes {dimension_semantics = [], scalar_prefetch = 0 : i64, scratch_operands = 2 : i64, tpu.core_type = #tpu.core_type<tc>} {
    %0 = tpu.iota {dimensions = array<i32: 1>} : vector<8x128xi32>
    %c32_i32 = arith.constant 32 : i32
    %1 = vector.broadcast %c32_i32 : i32 to vector<8x128xi32>
    %2 = arith.cmpi slt, %0, %1 : vector<8x128xi32>
    %cst = arith.constant 0.000000e+00 : f32
    %3 = vector.broadcast %cst : f32 to vector<8x128xf32>
    %cst_0 = arith.constant 0.000000e+00 : f32
    %4 = vector.broadcast %cst_0 : f32 to vector<8x128xf32>
    %c0 = arith.constant 0 : index
    %c0_1 = arith.constant 0 : index
    %c0_2 = arith.constant 0 : index
    %5 = vector.load %arg1[%c0, %c0_1, %c0_2] : memref<2x128x128xbf16, #tpu.memory_space<vmem>>, vector<1x128x128xbf16>
    %6 = vector.shape_cast %5 : vector<1x128x128xbf16> to vector<128x128xbf16>
    %c0_3 = arith.constant 0 : index
    %c0_4 = arith.constant 0 : index
    %c0_5 = arith.constant 0 : index
    %7 = vector.load %arg2[%c0_3, %c0_4, %c0_5] : memref<2x128x128xbf16, #tpu.memory_space<vmem>>, vector<1x128x128xbf16>
    %8 = vector.shape_cast %7 : vector<1x128x128xbf16> to vector<128x128xbf16>
    %c0_6 = arith.constant 0 : index
    %c0_7 = arith.constant 0 : index
    %c0_8 = arith.constant 0 : index
    %9 = vector.load %arg4[%c0_6, %c0_7, %c0_8] : memref<2x1x128xf32, #tpu.memory_space<vmem>>, vector<1x1x128xf32>
    %10 = vector.shape_cast %9 : vector<1x1x128xf32> to vector<1x128xf32>
    %11 = vector.shape_cast %10 : vector<1x128xf32> to vector<1x128xf32>
    %12 = vector.broadcast %11 : vector<1x128xf32> to vector<8x128xf32>
    %c0_9 = arith.constant 0 : index
    %c0_10 = arith.constant 0 : index
    %13 = vector.load %arg0[%c0_9, %c0_10] : memref<64x128xf32, #tpu.memory_space<vmem>>, vector<64x128xf32>
    %14 = arith.truncf %13 : vector<64x128xf32> to vector<64x128xbf16>
    %cst_11 = arith.constant dense<0.000000e+00> : vector<64x128xf32>
    %15 = tpu.matmul %14, %6, %cst_11 {dimension_numbers = #tpu.dot_dimension_numbers<[1], [0], [0], [1], [0, 0, 1, 1], [], []>} : vector<64x128xbf16>, vector<128x128xbf16>, vector<64x128xf32> -> vector<64x128xf32>
    %c0_12 = arith.constant 0 : index
    %c0_13 = arith.constant 0 : index
    %c0_14 = arith.constant 0 : index
    %16 = vector.load %arg3[%c0_12, %c0_13, %c0_14] : memref<2x1x128xf32, #tpu.memory_space<vmem>>, vector<1x1x128xf32>
    %17 = vector.shape_cast %16 : vector<1x1x128xf32> to vector<1x128xf32>
    %18 = vector.broadcast %17 : vector<1x128xf32> to vector<64x128xf32>
    %19 = arith.addf %15, %18 : vector<64x128xf32>
    %c0_15 = arith.constant 0 : index
    %c0_16 = arith.constant 0 : index
    %20 = vector.load %arg8[%c0_15, %c0_16] : memref<64x128xf32, #tpu.memory_space<vmem>>, vector<64x128xf32>
    tpu.vector_store %arg8[%c0_15, %c0_16], %19 {strides = array<i32>} : memref<64x128xf32, #tpu.memory_space<vmem>>, vector<64x128xf32>,
    %c0_17 = arith.constant 0 : index
    %c0_18 = arith.constant 0 : index
    %21 = vector.load %arg8[%c0_17, %c0_18] : memref<64x128xf32, #tpu.memory_space<vmem>>, vector<8x128xf32>
    %22 = arith.addf %21, %3 : vector<8x128xf32>
    %23 = arith.negf %22 : vector<8x128xf32>
    %24 = math.exp %23 : vector<8x128xf32>
    %cst_19 = arith.constant 1.000000e+00 : f32
    %25 = vector.broadcast %cst_19 : f32 to vector<8x128xf32>
    %26 = arith.addf %25, %24 : vector<8x128xf32>
    %27 = arith.divf %25, %26 : vector<8x128xf32>
    %c64_i32 = arith.constant 64 : i32
    %28 = tpu.dynamic_rotate %27 by %c64_i32 dim 1 : vector<8x128xf32>, i32 -> vector<8x128xf32>
    %29 = arith.addf %3, %12 : vector<8x128xf32>
    %30 = arith.mulf %28, %29 : vector<8x128xf32>
    %31 = arith.addf %21, %30 : vector<8x128xf32>
    %32 = math.tanh %31 : vector<8x128xf32>
    %c64_i32_20 = arith.constant 64 : i32
    %33 = tpu.dynamic_rotate %32 by %c64_i32_20 dim 1 : vector<8x128xf32>, i32 -> vector<8x128xf32>
    %c96_i32 = arith.constant 96 : i32
    %34 = tpu.dynamic_rotate %27 by %c96_i32 dim 1 : vector<8x128xf32>, i32 -> vector<8x128xf32>
    %35 = arith.subf %4, %33 : vector<8x128xf32>
    %36 = arith.mulf %34, %35 : vector<8x128xf32>
    %37 = arith.addf %33, %36 : vector<8x128xf32>
    %cst_21 = arith.constant 0.000000e+00 : f32
    %38 = vector.broadcast %cst_21 : f32 to vector<8x128xf32>
    %39 = arith.select %2, %37, %38 : vector<8x128xi1>, vector<8x128xf32>
    %c0_22 = arith.constant 0 : index
    %c0_23 = arith.constant 0 : index
    %40 = vector.load %arg7[%c0_22, %c0_23] : memref<64x128xf32, #tpu.memory_space<vmem>>, vector<8x128xf32>
    tpu.vector_store %arg7[%c0_22, %c0_23], %39 {strides = array<i32>} : memref<64x128xf32, #tpu.memory_space<vmem>>, vector<8x128xf32>,
    %c1_i32 = arith.constant 1 : i32
    %c8_i32 = arith.constant 8 : i32
    %41 = arith.muli %c1_i32, %c8_i32 : i32
    %42 = tpu.assume_multiple %41, 8 : i32
    %43 = arith.index_cast %42 : i32 to index
    %c0_24 = arith.constant 0 : index
    %44 = vector.load %arg8[%43, %c0_24] : memref<64x128xf32, #tpu.memory_space<vmem>>, vector<8x128xf32>
    %45 = arith.truncf %39 : vector<8x128xf32> to vector<8x128xbf16>
    %cst_25 = arith.constant dense<0.000000e+00> : vector<8x128xf32>
    %46 = tpu.matmul %45, %8, %cst_25 {dimension_numbers = #tpu.dot_dimension_numbers<[1], [0], [0], [1], [0, 0, 1, 1], [], []>} : vector<8x128xbf16>, vector<128x128xbf16>, vector<8x128xf32> -> vector<8x128xf32>
    %47 = arith.addf %44, %46 : vector<8x128xf32>
    %48 = arith.negf %47 : vector<8x128xf32>
    %49 = math.exp %48 : vector<8x128xf32>
    %cst_26 = arith.constant 1.000000e+00 : f32
    %50 = vector.broadcast %cst_26 : f32 to vector<8x128xf32>
    %51 = arith.addf %50, %49 : vector<8x128xf32>
    %52 = arith.divf %50, %51 : vector<8x128xf32>
    %c64_i32_27 = arith.constant 64 : i32
    %53 = tpu.dynamic_rotate %52 by %c64_i32_27 dim 1 : vector<8x128xf32>, i32 -> vector<8x128xf32>
    %54 = arith.addf %46, %12 : vector<8x128xf32>
    %55 = arith.mulf %53, %54 : vector<8x128xf32>
    %56 = arith.addf %44, %55 : vector<8x128xf32>
    %57 = math.tanh %56 : vector<8x128xf32>
    %c64_i32_28 = arith.constant 64 : i32
    %58 = tpu.dynamic_rotate %57 by %c64_i32_28 dim 1 : vector<8x128xf32>, i32 -> vector<8x128xf32>
    %c96_i32_29 = arith.constant 96 : i32
    %59 = tpu.dynamic_rotate %52 by %c96_i32_29 dim 1 : vector<8x128xf32>, i32 -> vector<8x128xf32>
    %60 = arith.subf %39, %58 : vector<8x128xf32>
    %61 = arith.mulf %59, %60 : vector<8x128xf32>
    %62 = arith.addf %58, %61 : vector<8x128xf32>
    %cst_30 = arith.constant 0.000000e+00 : f32
    %63 = vector.broadcast %cst_30 : f32 to vector<8x128xf32>
    %64 = arith.select %2, %62, %63 : vector<8x128xi1>, vector<8x128xf32>
    %65 = arith.index_cast %42 : i32 to index
    %c0_31 = arith.constant 0 : index
    %66 = vector.load %arg7[%65, %c0_31] : memref<64x128xf32, #tpu.memory_space<vmem>>, vector<8x128xf32>
    tpu.vector_store %arg7[%65, %c0_31], %64 {strides = array<i32>} : memref<64x128xf32, #tpu.memory_space<vmem>>, vector<8x128xf32>,
    %c2_i32 = arith.constant 2 : i32
    %c8_i32_32 = arith.constant 8 : i32
    %67 = arith.muli %c2_i32, %c8_i32_32 : i32
    %68 = tpu.assume_multiple %67, 8 : i32
    %69 = arith.index_cast %68 : i32 to index
    %c0_33 = arith.constant 0 : index
    %70 = vector.load %arg8[%69, %c0_33] : memref<64x128xf32, #tpu.memory_space<vmem>>, vector<8x128xf32>
    %71 = arith.truncf %64 : vector<8x128xf32> to vector<8x128xbf16>
    %cst_34 = arith.constant dense<0.000000e+00> : vector<8x128xf32>
    %72 = tpu.matmul %71, %8, %cst_34 {dimension_numbers = #tpu.dot_dimension_numbers<[1], [0], [0], [1], [0, 0, 1, 1], [], []>} : vector<8x128xbf16>, vector<128x128xbf16>, vector<8x128xf32> -> vector<8x128xf32>
    %73 = arith.addf %70, %72 : vector<8x128xf32>
    %74 = arith.negf %73 : vector<8x128xf32>
    %75 = math.exp %74 : vector<8x128xf32>
    %cst_35 = arith.constant 1.000000e+00 : f32
    %76 = vector.broadcast %cst_35 : f32 to vector<8x128xf32>
    %77 = arith.addf %76, %75 : vector<8x128xf32>
    %78 = arith.divf %76, %77 : vector<8x128xf32>
    %c64_i32_36 = arith.constant 64 : i32
    %79 = tpu.dynamic_rotate %78 by %c64_i32_36 dim 1 : vector<8x128xf32>, i32 -> vector<8x128xf32>
    %80 = arith.addf %72, %12 : vector<8x128xf32>
    %81 = arith.mulf %79, %80 : vector<8x128xf32>
    %82 = arith.addf %70, %81 : vector<8x128xf32>
    %83 = math.tanh %82 : vector<8x128xf32>
    %c64_i32_37 = arith.constant 64 : i32
    %84 = tpu.dynamic_rotate %83 by %c64_i32_37 dim 1 : vector<8x128xf32>, i32 -> vector<8x128xf32>
    %c96_i32_38 = arith.constant 96 : i32
    %85 = tpu.dynamic_rotate %78 by %c96_i32_38 dim 1 : vector<8x128xf32>, i32 -> vector<8x128xf32>
    %86 = arith.subf %64, %84 : vector<8x128xf32>
    %87 = arith.mulf %85, %86 : vector<8x128xf32>
    %88 = arith.addf %84, %87 : vector<8x128xf32>
    %cst_39 = arith.constant 0.000000e+00 : f32
    %89 = vector.broadcast %cst_39 : f32 to vector<8x128xf32>
    %90 = arith.select %2, %88, %89 : vector<8x128xi1>, vector<8x128xf32>
    %91 = arith.index_cast %68 : i32 to index
    %c0_40 = arith.constant 0 : index
    %92 = vector.load %arg7[%91, %c0_40] : memref<64x128xf32, #tpu.memory_space<vmem>>, vector<8x128xf32>
    tpu.vector_store %arg7[%91, %c0_40], %90 {strides = array<i32>} : memref<64x128xf32, #tpu.memory_space<vmem>>, vector<8x128xf32>,
    %c3_i32 = arith.constant 3 : i32
    %c8_i32_41 = arith.constant 8 : i32
    %93 = arith.muli %c3_i32, %c8_i32_41 : i32
    %94 = tpu.assume_multiple %93, 8 : i32
    %95 = arith.index_cast %94 : i32 to index
    %c0_42 = arith.constant 0 : index
    %96 = vector.load %arg8[%95, %c0_42] : memref<64x128xf32, #tpu.memory_space<vmem>>, vector<8x128xf32>
    %97 = arith.truncf %90 : vector<8x128xf32> to vector<8x128xbf16>
    %cst_43 = arith.constant dense<0.000000e+00> : vector<8x128xf32>
    %98 = tpu.matmul %97, %8, %cst_43 {dimension_numbers = #tpu.dot_dimension_numbers<[1], [0], [0], [1], [0, 0, 1, 1], [], []>} : vector<8x128xbf16>, vector<128x128xbf16>, vector<8x128xf32> -> vector<8x128xf32>
    %99 = arith.addf %96, %98 : vector<8x128xf32>
    %100 = arith.negf %99 : vector<8x128xf32>
    %101 = math.exp %100 : vector<8x128xf32>
    %cst_44 = arith.constant 1.000000e+00 : f32
    %102 = vector.broadcast %cst_44 : f32 to vector<8x128xf32>
    %103 = arith.addf %102, %101 : vector<8x128xf32>
    %104 = arith.divf %102, %103 : vector<8x128xf32>
    %c64_i32_45 = arith.constant 64 : i32
    %105 = tpu.dynamic_rotate %104 by %c64_i32_45 dim 1 : vector<8x128xf32>, i32 -> vector<8x128xf32>
    %106 = arith.addf %98, %12 : vector<8x128xf32>
    %107 = arith.mulf %105, %106 : vector<8x128xf32>
    %108 = arith.addf %96, %107 : vector<8x128xf32>
    %109 = math.tanh %108 : vector<8x128xf32>
    %c64_i32_46 = arith.constant 64 : i32
    %110 = tpu.dynamic_rotate %109 by %c64_i32_46 dim 1 : vector<8x128xf32>, i32 -> vector<8x128xf32>
    %c96_i32_47 = arith.constant 96 : i32
    %111 = tpu.dynamic_rotate %104 by %c96_i32_47 dim 1 : vector<8x128xf32>, i32 -> vector<8x128xf32>
    %112 = arith.subf %90, %110 : vector<8x128xf32>
    %113 = arith.mulf %111, %112 : vector<8x128xf32>
    %114 = arith.addf %110, %113 : vector<8x128xf32>
    %cst_48 = arith.constant 0.000000e+00 : f32
    %115 = vector.broadcast %cst_48 : f32 to vector<8x128xf32>
    %116 = arith.select %2, %114, %115 : vector<8x128xi1>, vector<8x128xf32>
    %117 = arith.index_cast %94 : i32 to index
    %c0_49 = arith.constant 0 : index
    %118 = vector.load %arg7[%117, %c0_49] : memref<64x128xf32, #tpu.memory_space<vmem>>, vector<8x128xf32>
    tpu.vector_store %arg7[%117, %c0_49], %116 {strides = array<i32>} : memref<64x128xf32, #tpu.memory_space<vmem>>, vector<8x128xf32>,
    %c4_i32 = arith.constant 4 : i32
    %c8_i32_50 = arith.constant 8 : i32
    %119 = arith.muli %c4_i32, %c8_i32_50 : i32
    %120 = tpu.assume_multiple %119, 8 : i32
    %121 = arith.index_cast %120 : i32 to index
    %c0_51 = arith.constant 0 : index
    %122 = vector.load %arg8[%121, %c0_51] : memref<64x128xf32, #tpu.memory_space<vmem>>, vector<8x128xf32>
    %123 = arith.truncf %116 : vector<8x128xf32> to vector<8x128xbf16>
    %cst_52 = arith.constant dense<0.000000e+00> : vector<8x128xf32>
    %124 = tpu.matmul %123, %8, %cst_52 {dimension_numbers = #tpu.dot_dimension_numbers<[1], [0], [0], [1], [0, 0, 1, 1], [], []>} : vector<8x128xbf16>, vector<128x128xbf16>, vector<8x128xf32> -> vector<8x128xf32>
    %125 = arith.addf %122, %124 : vector<8x128xf32>
    %126 = arith.negf %125 : vector<8x128xf32>
    %127 = math.exp %126 : vector<8x128xf32>
    %cst_53 = arith.constant 1.000000e+00 : f32
    %128 = vector.broadcast %cst_53 : f32 to vector<8x128xf32>
    %129 = arith.addf %128, %127 : vector<8x128xf32>
    %130 = arith.divf %128, %129 : vector<8x128xf32>
    %c64_i32_54 = arith.constant 64 : i32
    %131 = tpu.dynamic_rotate %130 by %c64_i32_54 dim 1 : vector<8x128xf32>, i32 -> vector<8x128xf32>
    %132 = arith.addf %124, %12 : vector<8x128xf32>
    %133 = arith.mulf %131, %132 : vector<8x128xf32>
    %134 = arith.addf %122, %133 : vector<8x128xf32>
    %135 = math.tanh %134 : vector<8x128xf32>
    %c64_i32_55 = arith.constant 64 : i32
    %136 = tpu.dynamic_rotate %135 by %c64_i32_55 dim 1 : vector<8x128xf32>, i32 -> vector<8x128xf32>
    %c96_i32_56 = arith.constant 96 : i32
    %137 = tpu.dynamic_rotate %130 by %c96_i32_56 dim 1 : vector<8x128xf32>, i32 -> vector<8x128xf32>
    %138 = arith.subf %116, %136 : vector<8x128xf32>
    %139 = arith.mulf %137, %138 : vector<8x128xf32>
    %140 = arith.addf %136, %139 : vector<8x128xf32>
    %cst_57 = arith.constant 0.000000e+00 : f32
    %141 = vector.broadcast %cst_57 : f32 to vector<8x128xf32>
    %142 = arith.select %2, %140, %141 : vector<8x128xi1>, vector<8x128xf32>
    %143 = arith.index_cast %120 : i32 to index
    %c0_58 = arith.constant 0 : index
    %144 = vector.load %arg7[%143, %c0_58] : memref<64x128xf32, #tpu.memory_space<vmem>>, vector<8x128xf32>
    tpu.vector_store %arg7[%143, %c0_58], %142 {strides = array<i32>} : memref<64x128xf32, #tpu.memory_space<vmem>>, vector<8x128xf32>,
    %c5_i32 = arith.constant 5 : i32
    %c8_i32_59 = arith.constant 8 : i32
    %145 = arith.muli %c5_i32, %c8_i32_59 : i32
    %146 = tpu.assume_multiple %145, 8 : i32
    %147 = arith.index_cast %146 : i32 to index
    %c0_60 = arith.constant 0 : index
    %148 = vector.load %arg8[%147, %c0_60] : memref<64x128xf32, #tpu.memory_space<vmem>>, vector<8x128xf32>
    %149 = arith.truncf %142 : vector<8x128xf32> to vector<8x128xbf16>
    %cst_61 = arith.constant dense<0.000000e+00> : vector<8x128xf32>
    %150 = tpu.matmul %149, %8, %cst_61 {dimension_numbers = #tpu.dot_dimension_numbers<[1], [0], [0], [1], [0, 0, 1, 1], [], []>} : vector<8x128xbf16>, vector<128x128xbf16>, vector<8x128xf32> -> vector<8x128xf32>
    %151 = arith.addf %148, %150 : vector<8x128xf32>
    %152 = arith.negf %151 : vector<8x128xf32>
    %153 = math.exp %152 : vector<8x128xf32>
    %cst_62 = arith.constant 1.000000e+00 : f32
    %154 = vector.broadcast %cst_62 : f32 to vector<8x128xf32>
    %155 = arith.addf %154, %153 : vector<8x128xf32>
    %156 = arith.divf %154, %155 : vector<8x128xf32>
    %c64_i32_63 = arith.constant 64 : i32
    %157 = tpu.dynamic_rotate %156 by %c64_i32_63 dim 1 : vector<8x128xf32>, i32 -> vector<8x128xf32>
    %158 = arith.addf %150, %12 : vector<8x128xf32>
    %159 = arith.mulf %157, %158 : vector<8x128xf32>
    %160 = arith.addf %148, %159 : vector<8x128xf32>
    %161 = math.tanh %160 : vector<8x128xf32>
    %c64_i32_64 = arith.constant 64 : i32
    %162 = tpu.dynamic_rotate %161 by %c64_i32_64 dim 1 : vector<8x128xf32>, i32 -> vector<8x128xf32>
    %c96_i32_65 = arith.constant 96 : i32
    %163 = tpu.dynamic_rotate %156 by %c96_i32_65 dim 1 : vector<8x128xf32>, i32 -> vector<8x128xf32>
    %164 = arith.subf %142, %162 : vector<8x128xf32>
    %165 = arith.mulf %163, %164 : vector<8x128xf32>
    %166 = arith.addf %162, %165 : vector<8x128xf32>
    %cst_66 = arith.constant 0.000000e+00 : f32
    %167 = vector.broadcast %cst_66 : f32 to vector<8x128xf32>
    %168 = arith.select %2, %166, %167 : vector<8x128xi1>, vector<8x128xf32>
    %169 = arith.index_cast %146 : i32 to index
    %c0_67 = arith.constant 0 : index
    %170 = vector.load %arg7[%169, %c0_67] : memref<64x128xf32, #tpu.memory_space<vmem>>, vector<8x128xf32>
    tpu.vector_store %arg7[%169, %c0_67], %168 {strides = array<i32>} : memref<64x128xf32, #tpu.memory_space<vmem>>, vector<8x128xf32>,
    %c6_i32 = arith.constant 6 : i32
    %c8_i32_68 = arith.constant 8 : i32
    %171 = arith.muli %c6_i32, %c8_i32_68 : i32
    %172 = tpu.assume_multiple %171, 8 : i32
    %173 = arith.index_cast %172 : i32 to index
    %c0_69 = arith.constant 0 : index
    %174 = vector.load %arg8[%173, %c0_69] : memref<64x128xf32, #tpu.memory_space<vmem>>, vector<8x128xf32>
    %175 = arith.truncf %168 : vector<8x128xf32> to vector<8x128xbf16>
    %cst_70 = arith.constant dense<0.000000e+00> : vector<8x128xf32>
    %176 = tpu.matmul %175, %8, %cst_70 {dimension_numbers = #tpu.dot_dimension_numbers<[1], [0], [0], [1], [0, 0, 1, 1], [], []>} : vector<8x128xbf16>, vector<128x128xbf16>, vector<8x128xf32> -> vector<8x128xf32>
    %177 = arith.addf %174, %176 : vector<8x128xf32>
    %178 = arith.negf %177 : vector<8x128xf32>
    %179 = math.exp %178 : vector<8x128xf32>
    %cst_71 = arith.constant 1.000000e+00 : f32
    %180 = vector.broadcast %cst_71 : f32 to vector<8x128xf32>
    %181 = arith.addf %180, %179 : vector<8x128xf32>
    %182 = arith.divf %180, %181 : vector<8x128xf32>
    %c64_i32_72 = arith.constant 64 : i32
    %183 = tpu.dynamic_rotate %182 by %c64_i32_72 dim 1 : vector<8x128xf32>, i32 -> vector<8x128xf32>
    %184 = arith.addf %176, %12 : vector<8x128xf32>
    %185 = arith.mulf %183, %184 : vector<8x128xf32>
    %186 = arith.addf %174, %185 : vector<8x128xf32>
    %187 = math.tanh %186 : vector<8x128xf32>
    %c64_i32_73 = arith.constant 64 : i32
    %188 = tpu.dynamic_rotate %187 by %c64_i32_73 dim 1 : vector<8x128xf32>, i32 -> vector<8x128xf32>
    %c96_i32_74 = arith.constant 96 : i32
    %189 = tpu.dynamic_rotate %182 by %c96_i32_74 dim 1 : vector<8x128xf32>, i32 -> vector<8x128xf32>
    %190 = arith.subf %168, %188 : vector<8x128xf32>
    %191 = arith.mulf %189, %190 : vector<8x128xf32>
    %192 = arith.addf %188, %191 : vector<8x128xf32>
    %cst_75 = arith.constant 0.000000e+00 : f32
    %193 = vector.broadcast %cst_75 : f32 to vector<8x128xf32>
    %194 = arith.select %2, %192, %193 : vector<8x128xi1>, vector<8x128xf32>
    %195 = arith.index_cast %172 : i32 to index
    %c0_76 = arith.constant 0 : index
    %196 = vector.load %arg7[%195, %c0_76] : memref<64x128xf32, #tpu.memory_space<vmem>>, vector<8x128xf32>
    tpu.vector_store %arg7[%195, %c0_76], %194 {strides = array<i32>} : memref<64x128xf32, #tpu.memory_space<vmem>>, vector<8x128xf32>,
    %c7_i32 = arith.constant 7 : i32
    %c8_i32_77 = arith.constant 8 : i32
    %197 = arith.muli %c7_i32, %c8_i32_77 : i32
    %198 = tpu.assume_multiple %197, 8 : i32
    %199 = arith.index_cast %198 : i32 to index
    %c0_78 = arith.constant 0 : index
    %200 = vector.load %arg8[%199, %c0_78] : memref<64x128xf32, #tpu.memory_space<vmem>>, vector<8x128xf32>
    %201 = arith.truncf %194 : vector<8x128xf32> to vector<8x128xbf16>
    %cst_79 = arith.constant dense<0.000000e+00> : vector<8x128xf32>
    %202 = tpu.matmul %201, %8, %cst_79 {dimension_numbers = #tpu.dot_dimension_numbers<[1], [0], [0], [1], [0, 0, 1, 1], [], []>} : vector<8x128xbf16>, vector<128x128xbf16>, vector<8x128xf32> -> vector<8x128xf32>
    %203 = arith.addf %200, %202 : vector<8x128xf32>
    %204 = arith.negf %203 : vector<8x128xf32>
    %205 = math.exp %204 : vector<8x128xf32>
    %cst_80 = arith.constant 1.000000e+00 : f32
    %206 = vector.broadcast %cst_80 : f32 to vector<8x128xf32>
    %207 = arith.addf %206, %205 : vector<8x128xf32>
    %208 = arith.divf %206, %207 : vector<8x128xf32>
    %c64_i32_81 = arith.constant 64 : i32
    %209 = tpu.dynamic_rotate %208 by %c64_i32_81 dim 1 : vector<8x128xf32>, i32 -> vector<8x128xf32>
    %210 = arith.addf %202, %12 : vector<8x128xf32>
    %211 = arith.mulf %209, %210 : vector<8x128xf32>
    %212 = arith.addf %200, %211 : vector<8x128xf32>
    %213 = math.tanh %212 : vector<8x128xf32>
    %c64_i32_82 = arith.constant 64 : i32
    %214 = tpu.dynamic_rotate %213 by %c64_i32_82 dim 1 : vector<8x128xf32>, i32 -> vector<8x128xf32>
    %c96_i32_83 = arith.constant 96 : i32
    %215 = tpu.dynamic_rotate %208 by %c96_i32_83 dim 1 : vector<8x128xf32>, i32 -> vector<8x128xf32>
    %216 = arith.subf %194, %214 : vector<8x128xf32>
    %217 = arith.mulf %215, %216 : vector<8x128xf32>
    %218 = arith.addf %214, %217 : vector<8x128xf32>
    %cst_84 = arith.constant 0.000000e+00 : f32
    %219 = vector.broadcast %cst_84 : f32 to vector<8x128xf32>
    %220 = arith.select %2, %218, %219 : vector<8x128xi1>, vector<8x128xf32>
    %221 = arith.index_cast %198 : i32 to index
    %c0_85 = arith.constant 0 : index
    %222 = vector.load %arg7[%221, %c0_85] : memref<64x128xf32, #tpu.memory_space<vmem>>, vector<8x128xf32>
    tpu.vector_store %arg7[%221, %c0_85], %220 {strides = array<i32>} : memref<64x128xf32, #tpu.memory_space<vmem>>, vector<8x128xf32>,
    %c7_i32_86 = arith.constant 7 : i32
    %c1 = arith.constant 1 : index
    %c0_87 = arith.constant 0 : index
    %c0_88 = arith.constant 0 : index
    %223 = vector.load %arg1[%c1, %c0_87, %c0_88] : memref<2x128x128xbf16, #tpu.memory_space<vmem>>, vector<1x128x128xbf16>
    %224 = vector.shape_cast %223 : vector<1x128x128xbf16> to vector<128x128xbf16>
    %c1_89 = arith.constant 1 : index
    %c0_90 = arith.constant 0 : index
    %c0_91 = arith.constant 0 : index
    %225 = vector.load %arg2[%c1_89, %c0_90, %c0_91] : memref<2x128x128xbf16, #tpu.memory_space<vmem>>, vector<1x128x128xbf16>
    %226 = vector.shape_cast %225 : vector<1x128x128xbf16> to vector<128x128xbf16>
    %c1_92 = arith.constant 1 : index
    %c0_93 = arith.constant 0 : index
    %c0_94 = arith.constant 0 : index
    %227 = vector.load %arg4[%c1_92, %c0_93, %c0_94] : memref<2x1x128xf32, #tpu.memory_space<vmem>>, vector<1x1x128xf32>
    %228 = vector.shape_cast %227 : vector<1x1x128xf32> to vector<1x128xf32>
    %229 = vector.shape_cast %228 : vector<1x128xf32> to vector<1x128xf32>
    %230 = vector.broadcast %229 : vector<1x128xf32> to vector<8x128xf32>
    %c0_95 = arith.constant 0 : index
    %c0_96 = arith.constant 0 : index
    %231 = vector.load %arg7[%c0_95, %c0_96] : memref<64x128xf32, #tpu.memory_space<vmem>>, vector<64x128xf32>
    %232 = arith.truncf %231 : vector<64x128xf32> to vector<64x128xbf16>
    %cst_97 = arith.constant dense<0.000000e+00> : vector<64x128xf32>
    %233 = tpu.matmul %232, %224, %cst_97 {dimension_numbers = #tpu.dot_dimension_numbers<[1], [0], [0], [1], [0, 0, 1, 1], [], []>} : vector<64x128xbf16>, vector<128x128xbf16>, vector<64x128xf32> -> vector<64x128xf32>
    %c1_98 = arith.constant 1 : index
    %c0_99 = arith.constant 0 : index
    %c0_100 = arith.constant 0 : index
    %234 = vector.load %arg3[%c1_98, %c0_99, %c0_100] : memref<2x1x128xf32, #tpu.memory_space<vmem>>, vector<1x1x128xf32>
    %235 = vector.shape_cast %234 : vector<1x1x128xf32> to vector<1x128xf32>
    %236 = vector.broadcast %235 : vector<1x128xf32> to vector<64x128xf32>
    %237 = arith.addf %233, %236 : vector<64x128xf32>
    %c0_101 = arith.constant 0 : index
    %c0_102 = arith.constant 0 : index
    %238 = vector.load %arg8[%c0_101, %c0_102] : memref<64x128xf32, #tpu.memory_space<vmem>>, vector<64x128xf32>
    tpu.vector_store %arg8[%c0_101, %c0_102], %237 {strides = array<i32>} : memref<64x128xf32, #tpu.memory_space<vmem>>, vector<64x128xf32>,
    %c0_103 = arith.constant 0 : index
    %c0_104 = arith.constant 0 : index
    %239 = vector.load %arg8[%c0_103, %c0_104] : memref<64x128xf32, #tpu.memory_space<vmem>>, vector<8x128xf32>
    %240 = arith.addf %239, %3 : vector<8x128xf32>
    %241 = arith.negf %240 : vector<8x128xf32>
    %242 = math.exp %241 : vector<8x128xf32>
    %cst_105 = arith.constant 1.000000e+00 : f32
    %243 = vector.broadcast %cst_105 : f32 to vector<8x128xf32>
    %244 = arith.addf %243, %242 : vector<8x128xf32>
    %245 = arith.divf %243, %244 : vector<8x128xf32>
    %c64_i32_106 = arith.constant 64 : i32
    %246 = tpu.dynamic_rotate %245 by %c64_i32_106 dim 1 : vector<8x128xf32>, i32 -> vector<8x128xf32>
    %247 = arith.addf %3, %230 : vector<8x128xf32>
    %248 = arith.mulf %246, %247 : vector<8x128xf32>
    %249 = arith.addf %239, %248 : vector<8x128xf32>
    %250 = math.tanh %249 : vector<8x128xf32>
    %c64_i32_107 = arith.constant 64 : i32
    %251 = tpu.dynamic_rotate %250 by %c64_i32_107 dim 1 : vector<8x128xf32>, i32 -> vector<8x128xf32>
    %c96_i32_108 = arith.constant 96 : i32
    %252 = tpu.dynamic_rotate %245 by %c96_i32_108 dim 1 : vector<8x128xf32>, i32 -> vector<8x128xf32>
    %253 = arith.subf %4, %251 : vector<8x128xf32>
    %254 = arith.mulf %252, %253 : vector<8x128xf32>
    %255 = arith.addf %251, %254 : vector<8x128xf32>
    %cst_109 = arith.constant 0.000000e+00 : f32
    %256 = vector.broadcast %cst_109 : f32 to vector<8x128xf32>
    %257 = arith.select %2, %255, %256 : vector<8x128xi1>, vector<8x128xf32>
    %c0_110 = arith.constant 0 : index
    %c0_111 = arith.constant 0 : index
    %258 = vector.load %arg5[%c0_110, %c0_111] : memref<64x128xf32, #tpu.memory_space<vmem>>, vector<8x128xf32>
    tpu.vector_store %arg5[%c0_110, %c0_111], %257 {strides = array<i32>} : memref<64x128xf32, #tpu.memory_space<vmem>>, vector<8x128xf32>,
    %c1_i32_112 = arith.constant 1 : i32
    %c8_i32_113 = arith.constant 8 : i32
    %259 = arith.muli %c1_i32_112, %c8_i32_113 : i32
    %260 = tpu.assume_multiple %259, 8 : i32
    %261 = arith.index_cast %260 : i32 to index
    %c0_114 = arith.constant 0 : index
    %262 = vector.load %arg8[%261, %c0_114] : memref<64x128xf32, #tpu.memory_space<vmem>>, vector<8x128xf32>
    %263 = arith.truncf %257 : vector<8x128xf32> to vector<8x128xbf16>
    %cst_115 = arith.constant dense<0.000000e+00> : vector<8x128xf32>
    %264 = tpu.matmul %263, %226, %cst_115 {dimension_numbers = #tpu.dot_dimension_numbers<[1], [0], [0], [1], [0, 0, 1, 1], [], []>} : vector<8x128xbf16>, vector<128x128xbf16>, vector<8x128xf32> -> vector<8x128xf32>
    %265 = arith.addf %262, %264 : vector<8x128xf32>
    %266 = arith.negf %265 : vector<8x128xf32>
    %267 = math.exp %266 : vector<8x128xf32>
    %cst_116 = arith.constant 1.000000e+00 : f32
    %268 = vector.broadcast %cst_116 : f32 to vector<8x128xf32>
    %269 = arith.addf %268, %267 : vector<8x128xf32>
    %270 = arith.divf %268, %269 : vector<8x128xf32>
    %c64_i32_117 = arith.constant 64 : i32
    %271 = tpu.dynamic_rotate %270 by %c64_i32_117 dim 1 : vector<8x128xf32>, i32 -> vector<8x128xf32>
    %272 = arith.addf %264, %230 : vector<8x128xf32>
    %273 = arith.mulf %271, %272 : vector<8x128xf32>
    %274 = arith.addf %262, %273 : vector<8x128xf32>
    %275 = math.tanh %274 : vector<8x128xf32>
    %c64_i32_118 = arith.constant 64 : i32
    %276 = tpu.dynamic_rotate %275 by %c64_i32_118 dim 1 : vector<8x128xf32>, i32 -> vector<8x128xf32>
    %c96_i32_119 = arith.constant 96 : i32
    %277 = tpu.dynamic_rotate %270 by %c96_i32_119 dim 1 : vector<8x128xf32>, i32 -> vector<8x128xf32>
    %278 = arith.subf %257, %276 : vector<8x128xf32>
    %279 = arith.mulf %277, %278 : vector<8x128xf32>
    %280 = arith.addf %276, %279 : vector<8x128xf32>
    %cst_120 = arith.constant 0.000000e+00 : f32
    %281 = vector.broadcast %cst_120 : f32 to vector<8x128xf32>
    %282 = arith.select %2, %280, %281 : vector<8x128xi1>, vector<8x128xf32>
    %283 = arith.index_cast %260 : i32 to index
    %c0_121 = arith.constant 0 : index
    %284 = vector.load %arg5[%283, %c0_121] : memref<64x128xf32, #tpu.memory_space<vmem>>, vector<8x128xf32>
    tpu.vector_store %arg5[%283, %c0_121], %282 {strides = array<i32>} : memref<64x128xf32, #tpu.memory_space<vmem>>, vector<8x128xf32>,
    %c2_i32_122 = arith.constant 2 : i32
    %c8_i32_123 = arith.constant 8 : i32
    %285 = arith.muli %c2_i32_122, %c8_i32_123 : i32
    %286 = tpu.assume_multiple %285, 8 : i32
    %287 = arith.index_cast %286 : i32 to index
    %c0_124 = arith.constant 0 : index
    %288 = vector.load %arg8[%287, %c0_124] : memref<64x128xf32, #tpu.memory_space<vmem>>, vector<8x128xf32>
    %289 = arith.truncf %282 : vector<8x128xf32> to vector<8x128xbf16>
    %cst_125 = arith.constant dense<0.000000e+00> : vector<8x128xf32>
    %290 = tpu.matmul %289, %226, %cst_125 {dimension_numbers = #tpu.dot_dimension_numbers<[1], [0], [0], [1], [0, 0, 1, 1], [], []>} : vector<8x128xbf16>, vector<128x128xbf16>, vector<8x128xf32> -> vector<8x128xf32>
    %291 = arith.addf %288, %290 : vector<8x128xf32>
    %292 = arith.negf %291 : vector<8x128xf32>
    %293 = math.exp %292 : vector<8x128xf32>
    %cst_126 = arith.constant 1.000000e+00 : f32
    %294 = vector.broadcast %cst_126 : f32 to vector<8x128xf32>
    %295 = arith.addf %294, %293 : vector<8x128xf32>
    %296 = arith.divf %294, %295 : vector<8x128xf32>
    %c64_i32_127 = arith.constant 64 : i32
    %297 = tpu.dynamic_rotate %296 by %c64_i32_127 dim 1 : vector<8x128xf32>, i32 -> vector<8x128xf32>
    %298 = arith.addf %290, %230 : vector<8x128xf32>
    %299 = arith.mulf %297, %298 : vector<8x128xf32>
    %300 = arith.addf %288, %299 : vector<8x128xf32>
    %301 = math.tanh %300 : vector<8x128xf32>
    %c64_i32_128 = arith.constant 64 : i32
    %302 = tpu.dynamic_rotate %301 by %c64_i32_128 dim 1 : vector<8x128xf32>, i32 -> vector<8x128xf32>
    %c96_i32_129 = arith.constant 96 : i32
    %303 = tpu.dynamic_rotate %296 by %c96_i32_129 dim 1 : vector<8x128xf32>, i32 -> vector<8x128xf32>
    %304 = arith.subf %282, %302 : vector<8x128xf32>
    %305 = arith.mulf %303, %304 : vector<8x128xf32>
    %306 = arith.addf %302, %305 : vector<8x128xf32>
    %cst_130 = arith.constant 0.000000e+00 : f32
    %307 = vector.broadcast %cst_130 : f32 to vector<8x128xf32>
    %308 = arith.select %2, %306, %307 : vector<8x128xi1>, vector<8x128xf32>
    %309 = arith.index_cast %286 : i32 to index
    %c0_131 = arith.constant 0 : index
    %310 = vector.load %arg5[%309, %c0_131] : memref<64x128xf32, #tpu.memory_space<vmem>>, vector<8x128xf32>
    tpu.vector_store %arg5[%309, %c0_131], %308 {strides = array<i32>} : memref<64x128xf32, #tpu.memory_space<vmem>>, vector<8x128xf32>,
    %c3_i32_132 = arith.constant 3 : i32
    %c8_i32_133 = arith.constant 8 : i32
    %311 = arith.muli %c3_i32_132, %c8_i32_133 : i32
    %312 = tpu.assume_multiple %311, 8 : i32
    %313 = arith.index_cast %312 : i32 to index
    %c0_134 = arith.constant 0 : index
    %314 = vector.load %arg8[%313, %c0_134] : memref<64x128xf32, #tpu.memory_space<vmem>>, vector<8x128xf32>
    %315 = arith.truncf %308 : vector<8x128xf32> to vector<8x128xbf16>
    %cst_135 = arith.constant dense<0.000000e+00> : vector<8x128xf32>
    %316 = tpu.matmul %315, %226, %cst_135 {dimension_numbers = #tpu.dot_dimension_numbers<[1], [0], [0], [1], [0, 0, 1, 1], [], []>} : vector<8x128xbf16>, vector<128x128xbf16>, vector<8x128xf32> -> vector<8x128xf32>
    %317 = arith.addf %314, %316 : vector<8x128xf32>
    %318 = arith.negf %317 : vector<8x128xf32>
    %319 = math.exp %318 : vector<8x128xf32>
    %cst_136 = arith.constant 1.000000e+00 : f32
    %320 = vector.broadcast %cst_136 : f32 to vector<8x128xf32>
    %321 = arith.addf %320, %319 : vector<8x128xf32>
    %322 = arith.divf %320, %321 : vector<8x128xf32>
    %c64_i32_137 = arith.constant 64 : i32
    %323 = tpu.dynamic_rotate %322 by %c64_i32_137 dim 1 : vector<8x128xf32>, i32 -> vector<8x128xf32>
    %324 = arith.addf %316, %230 : vector<8x128xf32>
    %325 = arith.mulf %323, %324 : vector<8x128xf32>
    %326 = arith.addf %314, %325 : vector<8x128xf32>
    %327 = math.tanh %326 : vector<8x128xf32>
    %c64_i32_138 = arith.constant 64 : i32
    %328 = tpu.dynamic_rotate %327 by %c64_i32_138 dim 1 : vector<8x128xf32>, i32 -> vector<8x128xf32>
    %c96_i32_139 = arith.constant 96 : i32
    %329 = tpu.dynamic_rotate %322 by %c96_i32_139 dim 1 : vector<8x128xf32>, i32 -> vector<8x128xf32>
    %330 = arith.subf %308, %328 : vector<8x128xf32>
    %331 = arith.mulf %329, %330 : vector<8x128xf32>
    %332 = arith.addf %328, %331 : vector<8x128xf32>
    %cst_140 = arith.constant 0.000000e+00 : f32
    %333 = vector.broadcast %cst_140 : f32 to vector<8x128xf32>
    %334 = arith.select %2, %332, %333 : vector<8x128xi1>, vector<8x128xf32>
    %335 = arith.index_cast %312 : i32 to index
    %c0_141 = arith.constant 0 : index
    %336 = vector.load %arg5[%335, %c0_141] : memref<64x128xf32, #tpu.memory_space<vmem>>, vector<8x128xf32>
    tpu.vector_store %arg5[%335, %c0_141], %334 {strides = array<i32>} : memref<64x128xf32, #tpu.memory_space<vmem>>, vector<8x128xf32>,
    %c4_i32_142 = arith.constant 4 : i32
    %c8_i32_143 = arith.constant 8 : i32
    %337 = arith.muli %c4_i32_142, %c8_i32_143 : i32
    %338 = tpu.assume_multiple %337, 8 : i32
    %339 = arith.index_cast %338 : i32 to index
    %c0_144 = arith.constant 0 : index
    %340 = vector.load %arg8[%339, %c0_144] : memref<64x128xf32, #tpu.memory_space<vmem>>, vector<8x128xf32>
    %341 = arith.truncf %334 : vector<8x128xf32> to vector<8x128xbf16>
    %cst_145 = arith.constant dense<0.000000e+00> : vector<8x128xf32>
    %342 = tpu.matmul %341, %226, %cst_145 {dimension_numbers = #tpu.dot_dimension_numbers<[1], [0], [0], [1], [0, 0, 1, 1], [], []>} : vector<8x128xbf16>, vector<128x128xbf16>, vector<8x128xf32> -> vector<8x128xf32>
    %343 = arith.addf %340, %342 : vector<8x128xf32>
    %344 = arith.negf %343 : vector<8x128xf32>
    %345 = math.exp %344 : vector<8x128xf32>
    %cst_146 = arith.constant 1.000000e+00 : f32
    %346 = vector.broadcast %cst_146 : f32 to vector<8x128xf32>
    %347 = arith.addf %346, %345 : vector<8x128xf32>
    %348 = arith.divf %346, %347 : vector<8x128xf32>
    %c64_i32_147 = arith.constant 64 : i32
    %349 = tpu.dynamic_rotate %348 by %c64_i32_147 dim 1 : vector<8x128xf32>, i32 -> vector<8x128xf32>
    %350 = arith.addf %342, %230 : vector<8x128xf32>
    %351 = arith.mulf %349, %350 : vector<8x128xf32>
    %352 = arith.addf %340, %351 : vector<8x128xf32>
    %353 = math.tanh %352 : vector<8x128xf32>
    %c64_i32_148 = arith.constant 64 : i32
    %354 = tpu.dynamic_rotate %353 by %c64_i32_148 dim 1 : vector<8x128xf32>, i32 -> vector<8x128xf32>
    %c96_i32_149 = arith.constant 96 : i32
    %355 = tpu.dynamic_rotate %348 by %c96_i32_149 dim 1 : vector<8x128xf32>, i32 -> vector<8x128xf32>
    %356 = arith.subf %334, %354 : vector<8x128xf32>
    %357 = arith.mulf %355, %356 : vector<8x128xf32>
    %358 = arith.addf %354, %357 : vector<8x128xf32>
    %cst_150 = arith.constant 0.000000e+00 : f32
    %359 = vector.broadcast %cst_150 : f32 to vector<8x128xf32>
    %360 = arith.select %2, %358, %359 : vector<8x128xi1>, vector<8x128xf32>
    %361 = arith.index_cast %338 : i32 to index
    %c0_151 = arith.constant 0 : index
    %362 = vector.load %arg5[%361, %c0_151] : memref<64x128xf32, #tpu.memory_space<vmem>>, vector<8x128xf32>
    tpu.vector_store %arg5[%361, %c0_151], %360 {strides = array<i32>} : memref<64x128xf32, #tpu.memory_space<vmem>>, vector<8x128xf32>,
    %c5_i32_152 = arith.constant 5 : i32
    %c8_i32_153 = arith.constant 8 : i32
    %363 = arith.muli %c5_i32_152, %c8_i32_153 : i32
    %364 = tpu.assume_multiple %363, 8 : i32
    %365 = arith.index_cast %364 : i32 to index
    %c0_154 = arith.constant 0 : index
    %366 = vector.load %arg8[%365, %c0_154] : memref<64x128xf32, #tpu.memory_space<vmem>>, vector<8x128xf32>
    %367 = arith.truncf %360 : vector<8x128xf32> to vector<8x128xbf16>
    %cst_155 = arith.constant dense<0.000000e+00> : vector<8x128xf32>
    %368 = tpu.matmul %367, %226, %cst_155 {dimension_numbers = #tpu.dot_dimension_numbers<[1], [0], [0], [1], [0, 0, 1, 1], [], []>} : vector<8x128xbf16>, vector<128x128xbf16>, vector<8x128xf32> -> vector<8x128xf32>
    %369 = arith.addf %366, %368 : vector<8x128xf32>
    %370 = arith.negf %369 : vector<8x128xf32>
    %371 = math.exp %370 : vector<8x128xf32>
    %cst_156 = arith.constant 1.000000e+00 : f32
    %372 = vector.broadcast %cst_156 : f32 to vector<8x128xf32>
    %373 = arith.addf %372, %371 : vector<8x128xf32>
    %374 = arith.divf %372, %373 : vector<8x128xf32>
    %c64_i32_157 = arith.constant 64 : i32
    %375 = tpu.dynamic_rotate %374 by %c64_i32_157 dim 1 : vector<8x128xf32>, i32 -> vector<8x128xf32>
    %376 = arith.addf %368, %230 : vector<8x128xf32>
    %377 = arith.mulf %375, %376 : vector<8x128xf32>
    %378 = arith.addf %366, %377 : vector<8x128xf32>
    %379 = math.tanh %378 : vector<8x128xf32>
    %c64_i32_158 = arith.constant 64 : i32
    %380 = tpu.dynamic_rotate %379 by %c64_i32_158 dim 1 : vector<8x128xf32>, i32 -> vector<8x128xf32>
    %c96_i32_159 = arith.constant 96 : i32
    %381 = tpu.dynamic_rotate %374 by %c96_i32_159 dim 1 : vector<8x128xf32>, i32 -> vector<8x128xf32>
    %382 = arith.subf %360, %380 : vector<8x128xf32>
    %383 = arith.mulf %381, %382 : vector<8x128xf32>
    %384 = arith.addf %380, %383 : vector<8x128xf32>
    %cst_160 = arith.constant 0.000000e+00 : f32
    %385 = vector.broadcast %cst_160 : f32 to vector<8x128xf32>
    %386 = arith.select %2, %384, %385 : vector<8x128xi1>, vector<8x128xf32>
    %387 = arith.index_cast %364 : i32 to index
    %c0_161 = arith.constant 0 : index
    %388 = vector.load %arg5[%387, %c0_161] : memref<64x128xf32, #tpu.memory_space<vmem>>, vector<8x128xf32>
    tpu.vector_store %arg5[%387, %c0_161], %386 {strides = array<i32>} : memref<64x128xf32, #tpu.memory_space<vmem>>, vector<8x128xf32>,
    %c6_i32_162 = arith.constant 6 : i32
    %c8_i32_163 = arith.constant 8 : i32
    %389 = arith.muli %c6_i32_162, %c8_i32_163 : i32
    %390 = tpu.assume_multiple %389, 8 : i32
    %391 = arith.index_cast %390 : i32 to index
    %c0_164 = arith.constant 0 : index
    %392 = vector.load %arg8[%391, %c0_164] : memref<64x128xf32, #tpu.memory_space<vmem>>, vector<8x128xf32>
    %393 = arith.truncf %386 : vector<8x128xf32> to vector<8x128xbf16>
    %cst_165 = arith.constant dense<0.000000e+00> : vector<8x128xf32>
    %394 = tpu.matmul %393, %226, %cst_165 {dimension_numbers = #tpu.dot_dimension_numbers<[1], [0], [0], [1], [0, 0, 1, 1], [], []>} : vector<8x128xbf16>, vector<128x128xbf16>, vector<8x128xf32> -> vector<8x128xf32>
    %395 = arith.addf %392, %394 : vector<8x128xf32>
    %396 = arith.negf %395 : vector<8x128xf32>
    %397 = math.exp %396 : vector<8x128xf32>
    %cst_166 = arith.constant 1.000000e+00 : f32
    %398 = vector.broadcast %cst_166 : f32 to vector<8x128xf32>
    %399 = arith.addf %398, %397 : vector<8x128xf32>
    %400 = arith.divf %398, %399 : vector<8x128xf32>
    %c64_i32_167 = arith.constant 64 : i32
    %401 = tpu.dynamic_rotate %400 by %c64_i32_167 dim 1 : vector<8x128xf32>, i32 -> vector<8x128xf32>
    %402 = arith.addf %394, %230 : vector<8x128xf32>
    %403 = arith.mulf %401, %402 : vector<8x128xf32>
    %404 = arith.addf %392, %403 : vector<8x128xf32>
    %405 = math.tanh %404 : vector<8x128xf32>
    %c64_i32_168 = arith.constant 64 : i32
    %406 = tpu.dynamic_rotate %405 by %c64_i32_168 dim 1 : vector<8x128xf32>, i32 -> vector<8x128xf32>
    %c96_i32_169 = arith.constant 96 : i32
    %407 = tpu.dynamic_rotate %400 by %c96_i32_169 dim 1 : vector<8x128xf32>, i32 -> vector<8x128xf32>
    %408 = arith.subf %386, %406 : vector<8x128xf32>
    %409 = arith.mulf %407, %408 : vector<8x128xf32>
    %410 = arith.addf %406, %409 : vector<8x128xf32>
    %cst_170 = arith.constant 0.000000e+00 : f32
    %411 = vector.broadcast %cst_170 : f32 to vector<8x128xf32>
    %412 = arith.select %2, %410, %411 : vector<8x128xi1>, vector<8x128xf32>
    %413 = arith.index_cast %390 : i32 to index
    %c0_171 = arith.constant 0 : index
    %414 = vector.load %arg5[%413, %c0_171] : memref<64x128xf32, #tpu.memory_space<vmem>>, vector<8x128xf32>
    tpu.vector_store %arg5[%413, %c0_171], %412 {strides = array<i32>} : memref<64x128xf32, #tpu.memory_space<vmem>>, vector<8x128xf32>,
    %c7_i32_172 = arith.constant 7 : i32
    %c8_i32_173 = arith.constant 8 : i32
    %415 = arith.muli %c7_i32_172, %c8_i32_173 : i32
    %416 = tpu.assume_multiple %415, 8 : i32
    %417 = arith.index_cast %416 : i32 to index
    %c0_174 = arith.constant 0 : index
    %418 = vector.load %arg8[%417, %c0_174] : memref<64x128xf32, #tpu.memory_space<vmem>>, vector<8x128xf32>
    %419 = arith.truncf %412 : vector<8x128xf32> to vector<8x128xbf16>
    %cst_175 = arith.constant dense<0.000000e+00> : vector<8x128xf32>
    %420 = tpu.matmul %419, %226, %cst_175 {dimension_numbers = #tpu.dot_dimension_numbers<[1], [0], [0], [1], [0, 0, 1, 1], [], []>} : vector<8x128xbf16>, vector<128x128xbf16>, vector<8x128xf32> -> vector<8x128xf32>
    %421 = arith.addf %418, %420 : vector<8x128xf32>
    %422 = arith.negf %421 : vector<8x128xf32>
    %423 = math.exp %422 : vector<8x128xf32>
    %cst_176 = arith.constant 1.000000e+00 : f32
    %424 = vector.broadcast %cst_176 : f32 to vector<8x128xf32>
    %425 = arith.addf %424, %423 : vector<8x128xf32>
    %426 = arith.divf %424, %425 : vector<8x128xf32>
    %c64_i32_177 = arith.constant 64 : i32
    %427 = tpu.dynamic_rotate %426 by %c64_i32_177 dim 1 : vector<8x128xf32>, i32 -> vector<8x128xf32>
    %428 = arith.addf %420, %230 : vector<8x128xf32>
    %429 = arith.mulf %427, %428 : vector<8x128xf32>
    %430 = arith.addf %418, %429 : vector<8x128xf32>
    %431 = math.tanh %430 : vector<8x128xf32>
    %c64_i32_178 = arith.constant 64 : i32
    %432 = tpu.dynamic_rotate %431 by %c64_i32_178 dim 1 : vector<8x128xf32>, i32 -> vector<8x128xf32>
    %c96_i32_179 = arith.constant 96 : i32
    %433 = tpu.dynamic_rotate %426 by %c96_i32_179 dim 1 : vector<8x128xf32>, i32 -> vector<8x128xf32>
    %434 = arith.subf %412, %432 : vector<8x128xf32>
    %435 = arith.mulf %433, %434 : vector<8x128xf32>
    %436 = arith.addf %432, %435 : vector<8x128xf32>
    %cst_180 = arith.constant 0.000000e+00 : f32
    %437 = vector.broadcast %cst_180 : f32 to vector<8x128xf32>
    %438 = arith.select %2, %436, %437 : vector<8x128xi1>, vector<8x128xf32>
    %439 = arith.index_cast %416 : i32 to index
    %c0_181 = arith.constant 0 : index
    %440 = vector.load %arg5[%439, %c0_181] : memref<64x128xf32, #tpu.memory_space<vmem>>, vector<8x128xf32>
    tpu.vector_store %arg5[%439, %c0_181], %438 {strides = array<i32>} : memref<64x128xf32, #tpu.memory_space<vmem>>, vector<8x128xf32>,
    %c7_i32_182 = arith.constant 7 : i32
    %c0_183 = arith.constant 0 : index
    %c0_184 = arith.constant 0 : index
    %441 = vector.load %arg6[%c0_183, %c0_184] : memref<8x128xf32, #tpu.memory_space<vmem>>, vector<8x128xf32>
    tpu.vector_store %arg6[%c0_183, %c0_184], %438 {strides = array<i32>} : memref<8x128xf32, #tpu.memory_space<vmem>>, vector<8x128xf32>,
    return
  }
}

</mosaic_0001>

<bundles_post_ra>
// kernel: tpu_custom_call.1
= control target key start
LH: loop header
LB: loop body
LE: loop exit
PB: predicated region body
PF: predicated region fallthrough
CT: control target
= control target key end

     0   :  { %12 = vsyncpa [#allocation5], 0  ;;  %s3034_s0 = inlined_call_operand.hbm [shape: f32[64,128], index: 0, kind: input, shape index: {}]   ;;  %s3035_s1 = inlined_call_operand.hbm [shape: bf16[2,128,128], index: 1, kind: input, shape index: {}]   ;;  %s3036_s2 = inlined_call_operand.hbm [shape: bf16[2,128,128], index: 2, kind: input, shape index: {}]   ;;  %s3037_s3 = inlined_call_operand.vmem [shape: f32[2,1,128], index: 3, kind: input, shape index: {}]   ;;  %s3038_s4 = inlined_call_operand.vmem [shape: f32[2,1,128], index: 4, kind: input, shape index: {}]   ;;  %s3039_s5 = inlined_call_operand.hbm [shape: f32[64,128], index: 5, kind: output, shape index: {0}]   ;;  %s3040_s6 = inlined_call_operand.hbm [shape: f32[8,128], index: 6, kind: output, shape index: {1}]  }
   0x1   :  { %13 = vsyncpa [#allocation8], 0 }
   0x2   :  { %14 = vsyncpa [#allocation6], 0 }
   0x3   :  { %15 = vsyncpa [#allocation12], 0  ;;  %s2367_s21 = smov [#allocation7]   ;;  %s2249_s25 = scalar_lea.hbm %s3035_s1, 2048 }
   0x4   :  { %s33_s22 = sshll.u32 %s2367_s21, 4  ;;  %p2250_p0 = scmp.ne.s32.totalorder %s3035_s1, %s2249_s25  ;;  %s34_s22 = int_to_ptr.vmem [resolvable:$true] %s33_s22 }
   0x5   :  { %p2253_p1 = scmp.lt.u32.totalorder %s2249_s25, %s3035_s1 }
   0x7   :  { %p2255_p2 = pnand %p2253_p1, %p2250_p0 }
   0x9   :  { %2258 = shalt.err (!%p2255_p2)
}
   0xa   :  { %s2259_s30 = scalar_lea.vmem %s34_s22, 2048  ;;  %p2264_p4 = scmp.lt.s32.totalorder %s34_s22, %s34_s22 }
   0xb   :  { %p2260_p3 = scmp.ne.s32.totalorder %s34_s22, %s2259_s30  ;;  %p2265_p5 = scmp.lt.s32.totalorder %s2259_s30, %s2259_s30 }
   0xd   :  { %p2266_p6 = por %p2265_p5, %p2264_p4 }
   0xf   :  { %p2267_p7 = pnand %p2266_p6, %p2260_p3 }
  0x11   :  { %2270 = shalt.err (!%p2267_p7)
}
  0x12   :  { %s2368_s7 = smov 64   ;;  %s2369_s8 = smov 4  }
  0x13   :  { %39 = dma.hbm_to_vmem [thread:$0]  %s3035_s1, 2048, %s34_s22, [#allocation8], %s2368_s7, %s2368_s7, %s2369_s8  }
  0x14   :  { %s2370_s11 = smov [#allocation4]   ;;  %s2271_s15 = scalar_lea.hbm %s3034_s0, 1024 }
  0x15   :  { %s21_s12 = sshll.u32 %s2370_s11, 4  ;;  %p2272_p8 = scmp.ne.s32.totalorder %s3034_s0, %s2271_s15  ;;  %s22_s12 = int_to_ptr.vmem [resolvable:$true] %s21_s12 }
  0x16   :  { %p2275_p9 = scmp.lt.u32.totalorder %s2271_s15, %s3034_s0 }
  0x18   :  { %p2277_p10 = pnand %p2275_p9, %p2272_p8 }
  0x1a   :  { %2280 = shalt.err (!%p2277_p10)
}
  0x1b   :  { %s2281_s20 = scalar_lea.vmem %s22_s12, 1024  ;;  %p2286_p12 = scmp.lt.s32.totalorder %s22_s12, %s22_s12 }
  0x1c   :  { %p2282_p11 = scmp.ne.s32.totalorder %s22_s12, %s2281_s20  ;;  %p2287_p13 = scmp.lt.s32.totalorder %s2281_s20, %s2281_s20 }
  0x1e   :  { %p2288_p0 = por %p2287_p13, %p2286_p12 }
  0x20   :  { %p2289_p1 = pnand %p2288_p0, %p2282_p11 }
  0x22   :  { %2292 = shalt.err (!%p2289_p1)
}
  0x23   :  { %s2371_s1 = smov 128   ;;  %s2372_s21 = smov 8  }
  0x24   :  { %27 = dma.hbm_to_vmem [thread:$0]  %s3034_s0, 1024, %s22_s12, [#allocation5], %s2371_s1, %s2371_s1, %s2372_s21  }
  0x25   :  { %s2373_s24 = smov [#allocation9]   ;;  %s2293_s28 = scalar_lea.hbm %s3036_s2, 2048 }
  0x26   :  { %s45_s25 = sshll.u32 %s2373_s24, 4  ;;  %p2294_p2 = scmp.ne.s32.totalorder %s3036_s2, %s2293_s28  ;;  %s46_s25 = int_to_ptr.vmem [resolvable:$true] %s45_s25 }
  0x27   :  { %p2297_p3 = scmp.lt.u32.totalorder %s2293_s28, %s3036_s2 }
  0x29   :  { %p2299_p4 = pnand %p2297_p3, %p2294_p2 }
  0x2b   :  { %2302 = shalt.err (!%p2299_p4)
}
  0x2c   :  { %s2303_s11 = scalar_lea.vmem %s46_s25, 2048  ;;  %p2308_p6 = scmp.lt.s32.totalorder %s46_s25, %s46_s25 }
  0x2d   :  { %p2304_p5 = scmp.ne.s32.totalorder %s46_s25, %s2303_s11  ;;  %p2309_p7 = scmp.lt.s32.totalorder %s2303_s11, %s2303_s11 }
  0x2f   :  { %p2310_p8 = por %p2309_p7, %p2308_p6 }
  0x31   :  { %p2311_p9 = pnand %p2310_p8, %p2304_p5 }
  0x33   :  { %2314 = shalt.err (!%p2311_p9)
}
  0x34   :  { %51 = dma.hbm_to_vmem [thread:$0]  %s3036_s2, 2048, %s46_s25, [#allocation8], %s2368_s7, %s2368_s7, %s2369_s8  }
  0x35   :  { %2359 = dma.done.wait [#allocation5], 1024  }
  0x36   :  { %2360 = vsyncadd [#allocation5], 4294966272 }
  0x37   :  { %2361 = dma.done.wait [#allocation8], 4096  }
  0x38   :  { %2362 = vsyncadd [#allocation8], 4294963200  ;;  %v2121_v0 = vld [vmem:[#allocation7] sm:$0xff]   ;;  %v2122_v1 = vld [vmem:[#allocation7 + $0x8] sm:$0xff]   ;;  %s2374_s13 = smov 96   ;;  %v2375_v25 = vmov 0.0   ;;  %v66_v38 = vlaneseq }
  0x39   :  { %1781 = vmatprep.subr.bf16.mxu0 %v2121_v0  ;;  %v2123_v2 = vld [vmem:[#allocation7 + $0x10] sm:$0xff]   ;;  %v2124_v3 = vld [vmem:[#allocation7 + $0x18] sm:$0xff]   ;;  %v108_v4 = vld [vmem:[#allocation4] sm:$0xff]  ;;  %1805 = vmatprep.subr.bf16.mxu1 %v2375_v25  ;;  %vm2376_vm0 = vmmov 0   ;;  %s2378_s20 = smov [#allocation11]  }
  0x3a   :  { %1782 = vmatpush3.bf16.msra.mxu0 %v2121_v0  ;;  %v109_v5 = vld [vmem:[#allocation4 + $0x8] sm:$0xff]  ;;  %v2125_v7 = vld [vmem:[#allocation7 + $0x20] sm:$0xff]   ;;  %v2127_v9 = vld [vmem:[#allocation7 + $0x30] sm:$0xff]   ;;  %1821 = vmatprep.mubr.msk.bf16.mxu1 %vm2376_vm0, %v2375_v25  ;;  %v2532_v39 = vand.u32 127, %v66_v38  ;;  %s1509_s22 = sshll.u32 %s2378_s20, 4  ;;  %s1510_s22 = int_to_ptr.vmem [resolvable:$true] %s1509_s22 }
  0x3b   :  { %1783 = vmatprep.subr.bf16.mxu0 %v2122_v1  ;;  %v116_v6 = vpack.c.bf16 %v109_v5, %v108_v4  ;;  %v2126_v8 = vld [vmem:[#allocation7 + $0x28] sm:$0xff]   ;;  %v2128_v10 = vld [vmem:[#allocation7 + $0x38] sm:$0xff]   ;;  %v110_v11 = vld [vmem:[#allocation4 + $0x10] sm:$0xff] }
  0x3c   :  { %v111_v12 = vld [vmem:[#allocation4 + $0x18] sm:$0xff]  ;;  %v2462_v14 = vld [vmem:[%s3037_s3] ss:$0 sm:$0xff]  ;;  %v2478_v26 = vld [vmem:[#allocation9 + $0x8] sm:$0xff]   ;;  %vm68_vm1 = vcmp.lt.s32.totalorder %v2532_v39, 32 }
  0x3d   :  { %1797 = vmatprep.mubr.bf16.mxu0 %v116_v6  ;;  %v117_v13 = vpack.c.bf16 %v111_v12, %v110_v11  ;;  %v2473_v24 = vld [vmem:[#allocation9] sm:$0xff]   ;;  %v2484_v27 = vld [vmem:[#allocation9 + $0x10] sm:$0xff]   ;;  %v2490_v28 = vld [vmem:[#allocation9 + $0x18] sm:$0xff]  }
  0x3e   :  { %1784 = vmatpush3.bf16.msra.mxu0 %v2122_v1  ;;  %1806 = vmatpush3.bf16.msra.mxu1 %v2473_v24  ;;  %v2496_v29 = vld [vmem:[#allocation9 + $0x20] sm:$0xff]   ;;  %v2502_v30 = vld [vmem:[#allocation9 + $0x28] sm:$0xff]   ;;  %v2517_v34 = vld [vmem:[#allocation9 + $0x30] sm:$0xff]  }
  0x3f   :  { %1785 = vmatprep.subr.bf16.mxu0 %v2123_v2  ;;  %1807 = vmatprep.subr.bf16.mxu1 %v2375_v25  ;;  %v2514_v31 = vld [vmem:[%s3038_s4] ss:$0 sm:$0xff]  ;;  %v2523_v36 = vld [vmem:[#allocation9 + $0x38] sm:$0xff]   ;;  %vm2540_vm2 = vmpackc.low %vm68_vm1, %vm68_vm1 }
  0x40   :  { %v112_v57 = vld [vmem:[#allocation4 + $0x20] sm:$0xff]  ;;  %v113_v58 = vld [vmem:[#allocation4 + $0x28] sm:$0xff]  ;;  %v114_v59 = vld [vmem:[#allocation4 + $0x30] sm:$0xff] }
  0x41   :  { %v118_v60 = vpack.c.bf16 %v113_v58, %v112_v57  ;;  %v115_v61 = vld [vmem:[#allocation4 + $0x38] sm:$0xff] }
  0x42   :  { %1786 = vmatpush3.bf16.msra.mxu0 %v2123_v2  ;;  %1808 = vmatpush3.bf16.msra.mxu1 %v2478_v26  ;;  %v119_v62 = vpack.c.bf16 %v115_v61, %v114_v59 }
  0x43   :  { %1787 = vmatprep.subr.bf16.mxu0 %v2124_v3  ;;  %1809 = vmatprep.subr.bf16.mxu1 %v2375_v25 }
  0x46   :  { %1788 = vmatpush3.bf16.msra.mxu0 %v2124_v3  ;;  %1810 = vmatpush3.bf16.msra.mxu1 %v2484_v27 }
  0x47   :  { %1789 = vmatprep.subr.bf16.mxu0 %v2125_v7  ;;  %1811 = vmatprep.subr.bf16.mxu1 %v2375_v25 }
  0x4a   :  { %1790 = vmatpush3.bf16.msra.mxu0 %v2125_v7  ;;  %1812 = vmatpush3.bf16.msra.mxu1 %v2490_v28 }
  0x4b   :  { %1791 = vmatprep.subr.bf16.mxu0 %v2126_v8  ;;  %1813 = vmatprep.subr.bf16.mxu1 %v2375_v25 }
  0x4e   :  { %1792 = vmatpush3.bf16.msra.mxu0 %v2126_v8  ;;  %1814 = vmatpush3.bf16.msra.mxu1 %v2496_v29 }
  0x4f   :  { %1793 = vmatprep.subr.bf16.mxu0 %v2127_v9  ;;  %1815 = vmatprep.subr.bf16.mxu1 %v2375_v25 }
  0x52   :  { %1794 = vmatpush3.bf16.msra.mxu0 %v2127_v9  ;;  %1816 = vmatpush3.bf16.msra.mxu1 %v2502_v30 }
  0x53   :  { %1795 = vmatprep.subr.bf16.mxu0 %v2128_v10  ;;  %1817 = vmatprep.subr.bf16.mxu1 %v2375_v25 }
  0x56   :  { %1796 = vmatpush3.bf16.msra.mxu0 %v2128_v10  ;;  %1818 = vmatpush3.bf16.msra.mxu1 %v2517_v34 }
  0x57   :  { %1825 = vmatprep.subr.bf16.mxu0 %v2375_v25  ;;  %1819 = vmatprep.subr.bf16.mxu1 %v2375_v25 }
  0x59   :  { %1798 = vmatmul.mubr.bf16.vlgmr.msra.gmra.mrb[0].mxu0 %v117_v13 }
  0x5a   :  { %1826 = vmatpush3.bf16.msra.mxu0 %v2473_v24  ;;  %1820 = vmatpush3.bf16.msra.mxu1 %v2523_v36 }
  0x5b   :  { %1827 = vmatprep.subr.bf16.mxu0 %v2375_v25  ;;  %1845 = vmatprep.subr.bf16.mxu1 %v2375_v25 }
  0x5c   :  { %1801 = vmatprep.mubr.bf16.mxu0 %v118_v60 }
  0x5e   :  { %1828 = vmatpush3.bf16.msra.mxu0 %v2478_v26 }
  0x5f   :  { %1829 = vmatprep.subr.bf16.mxu0 %v2375_v25 }
  0x61   :  { %1802 = vmatmul.mubr.bf16.gmra.mrb[4].mxu0 %v119_v62 }
  0x62   :  { %1830 = vmatpush3.bf16.msra.mxu0 %v2484_v27  ;;  %1841 = vmatprep.mubr.msk.bf16.mxu0 %vm2376_vm0, %v2375_v25 }
  0x63   :  { %1831 = vmatprep.subr.bf16.mxu0 %v2375_v25 }
  0x66   :  { %1832 = vmatpush3.bf16.msra.mxu0 %v2490_v28 }
  0x67   :  { %1833 = vmatprep.subr.bf16.mxu0 %v2375_v25 }
  0x6a   :  { %1834 = vmatpush3.bf16.msra.mxu0 %v2496_v29 }
  0x6b   :  { %1835 = vmatprep.subr.bf16.mxu0 %v2375_v25 }
  0x6e   :  { %1836 = vmatpush3.bf16.msra.mxu0 %v2502_v30 }
  0x6f   :  { %1837 = vmatprep.subr.bf16.mxu0 %v2375_v25 }
  0x72   :  { %1838 = vmatpush3.bf16.msra.mxu0 %v2517_v34 }
  0x73   :  { %1839 = vmatprep.subr.bf16.mxu0 %v2375_v25 }
  0x76   :  { %1840 = vmatpush3.bf16.msra.mxu0 %v2523_v36 }
  0x77   :  { %1865 = vmatprep.subr.bf16.mxu0 %v2375_v25 }
 0x12c   :  { %v2464_v15 = vpop.f32.mrb[0].mxu0 }
 0x12d   :  { %v209_v16 = vpop.f32.mrb[1].mxu0 }
 0x12e   :  { %v210_v17 = vadd.f32 %v2462_v14, %v209_v16  ;;  %v2467_v18 = vpop.f32.mrb[2].mxu0 }
 0x12f   :  { %v2469_v19 = vpop.f32.mrb[3].mxu0 }
 0x130   :  { %v1533_v20 = vmul.f32 -1.442695, %v210_v17  ;;  %v213_v47 = vadd.f32 %v2462_v14, %v2469_v19 }
 0x132   :  { %2153 = vpow2.f32 %v1533_v20 }
 0x134   :  { %v2574_v4 = vpop.f32.mrb[4].mxu0 }
 0x135   :  { %v2576_v5 = vpop.f32.mrb[5].mxu0 }
 0x136   :  { %v2578_v6 = vpop.f32.mrb[6].mxu0 }
 0x137   :  { %v2580_v7 = vpop.f32.mrb[7].mxu0 }
 0x13c   :  { %v2154_v21 = vpop.eup %2153 }
 0x13d   :  { %v253_v22 = vadd.f32 1.0, %v2154_v21 }
 0x13f   :  { %2155 = vrcp.f32 %v253_v22 }
 0x149   :  { %v2156_v23 = vpop.eup %2155 }
 0x14a   :  { %264 = vrot.lane.b32.xlu1 %v2156_v23, %s2374_s13  ;;  %256 = vrot.lane.b32.xlu0 %v2156_v23, %s2368_s7 }
 0x1bc   :  { %v257_v32 = vpop.permute.xlu0 %256  ;;  %v265_v42 = vpop.permute.xlu1 %264 }
 0x1bd   :  { %v259_v33 = vmul.f32 %v2514_v31, %v257_v32 }
 0x1bf   :  { %v260_v35 = vadd.f32 %v259_v33, %v210_v17  ;;  %v218_v17 = vadd.f32 %v2464_v15, %v2462_v14 }
 0x1c1   :  { %2157 = vtanh.f32 %v260_v35 }
 0x1cb   :  { %v2158_v37 = vpop.eup %2157 }
 0x1cc   :  { %262 = vrot.lane.b32.xlu0 %v2158_v37, %s2368_s7 }
 0x23e   :  { %v263_v40 = vpop.permute.xlu0 %262 }
 0x23f   :  { %v266_v41 = vsub.f32 0.0, %v263_v40 }
 0x241   :  { %v267_v43 = vmul.f32 %v266_v41, %v265_v42 }
 0x243   :  { %v2535_v44 = vadd.f32 %v267_v43, %v263_v40 }
 0x245   :  { %v1543_v46 = vpack.c.bf16 %v2535_v44, %v2535_v44  ;;  %v269_v9 = vsel %vm68_vm1, %v2535_v44, 0.0 }
 0x247   :  { %1822 = vmatmul.mubr.msk.bf16.vlgmr.msra.gmra.mrb[0].mxu1 %vm2540_vm2, %v1543_v46 }
 0x248   :  { %1846 = vmatpush3.bf16.msra.mxu1 %v2473_v24  ;;  %1861 = vmatprep.mubr.msk.bf16.mxu1 %vm2376_vm0, %v2375_v25 }
 0x249   :  { %1847 = vmatprep.subr.bf16.mxu1 %v2375_v25 }
 0x24c   :  { %1848 = vmatpush3.bf16.msra.mxu1 %v2478_v26 }
 0x24d   :  { %1849 = vmatprep.subr.bf16.mxu1 %v2375_v25 }
 0x250   :  { %1850 = vmatpush3.bf16.msra.mxu1 %v2484_v27 }
 0x251   :  { %1851 = vmatprep.subr.bf16.mxu1 %v2375_v25 }
 0x254   :  { %1852 = vmatpush3.bf16.msra.mxu1 %v2490_v28 }
 0x255   :  { %1853 = vmatprep.subr.bf16.mxu1 %v2375_v25 }
 0x258   :  { %1854 = vmatpush3.bf16.msra.mxu1 %v2496_v29 }
 0x259   :  { %1855 = vmatprep.subr.bf16.mxu1 %v2375_v25 }
 0x25c   :  { %1856 = vmatpush3.bf16.msra.mxu1 %v2502_v30 }
 0x25d   :  { %1857 = vmatprep.subr.bf16.mxu1 %v2375_v25 }
 0x260   :  { %1858 = vmatpush3.bf16.msra.mxu1 %v2517_v34 }
 0x261   :  { %1859 = vmatprep.subr.bf16.mxu1 %v2375_v25 }
 0x264   :  { %1860 = vmatpush3.bf16.msra.mxu1 %v2523_v36 }
 0x265   :  { %1885 = vmatprep.subr.bf16.mxu1 %v2375_v25 }
 0x31a   :  { %v356_v48 = vpop.f32.mrb[0].mxu1 }
 0x31b   :  { %v362_v49 = vadd.f32 %v356_v48, %v213_v47  ;;  %v1823_v50 = vpop.f32.mrb[1].mxu1  ;;  %v371_v63 = vadd.f32 %v2514_v31, %v356_v48 }
 0x31c   :  { %v359_v51 = vpop.f32.mrb[2].mxu1 }
 0x31d   :  { %v1545_v52 = vmul.f32 -1.442695, %v362_v49  ;;  %v1824_v53 = vpop.f32.mrb[3].mxu1 }
 0x31f   :  { %2159 = vpow2.f32 %v1545_v52  ;;  %v221_v52 = vadd.f32 %v2467_v18, %v2462_v14 }
 0x329   :  { %v2160_v54 = vpop.eup %2159 }
 0x32a   :  { %v366_v55 = vadd.f32 1.0, %v2160_v54 }
 0x32c   :  { %2161 = vrcp.f32 %v366_v55 }
 0x336   :  { %v2162_v56 = vpop.eup %2161 }
 0x337   :  { %369 = vrot.lane.b32.xlu1 %v2162_v56, %s2368_s7 }
 0x33b   :  { %377 = vrot.lane.b32.xlu1 %v2162_v56, %s2374_s13 }
 0x3a9   :  { %v370_v0 = vpop.permute.xlu1 %369 }
 0x3aa   :  { %v372_v1 = vmul.f32 %v371_v63, %v370_v0 }
 0x3ac   :  { %v373_v2 = vadd.f32 %v372_v1, %v213_v47 }
 0x3ad   :  { %v378_v11 = vpop.permute.xlu1 %377 }
 0x3ae   :  { %2163 = vtanh.f32 %v373_v2 }
 0x3b8   :  { %v2164_v3 = vpop.eup %2163 }
 0x3b9   :  { %375 = vrot.lane.b32.xlu0 %v2164_v3, %s2368_s7 }
 0x42b   :  { %v376_v8 = vpop.permute.xlu0 %375 }
 0x42c   :  { %v379_v10 = vsub.f32 %v269_v9, %v376_v8 }
 0x42e   :  { %v380_v12 = vmul.f32 %v379_v10, %v378_v11 }
 0x430   :  { %v2585_v13 = vadd.f32 %v380_v12, %v376_v8 }
 0x432   :  { %v1547_v16 = vpack.c.bf16 %v2585_v13, %v2585_v13  ;;  %v382_v46 = vsel %vm68_vm1, %v2585_v13, 0.0 }
 0x434   :  { %1842 = vmatmul.mubr.msk.bf16.vlgmr.msra.gmra.mrb[8].mxu0 %vm2540_vm2, %v1547_v16  ;;  %v226_v16 = vadd.f32 %v2462_v14, %v2576_v5 }
 0x435   :  { %1866 = vmatpush3.bf16.msra.mxu0 %v2473_v24  ;;  %1881 = vmatprep.mubr.msk.bf16.mxu0 %vm2376_vm0, %v2375_v25 }
 0x436   :  { %1867 = vmatprep.subr.bf16.mxu0 %v2375_v25 }
 0x439   :  { %1868 = vmatpush3.bf16.msra.mxu0 %v2478_v26 }
 0x43a   :  { %1869 = vmatprep.subr.bf16.mxu0 %v2375_v25 }
 0x43d   :  { %1870 = vmatpush3.bf16.msra.mxu0 %v2484_v27 }
 0x43e   :  { %1871 = vmatprep.subr.bf16.mxu0 %v2375_v25 }
 0x441   :  { %1872 = vmatpush3.bf16.msra.mxu0 %v2490_v28 }
 0x442   :  { %1873 = vmatprep.subr.bf16.mxu0 %v2375_v25 }
 0x445   :  { %1874 = vmatpush3.bf16.msra.mxu0 %v2496_v29 }
 0x446   :  { %1875 = vmatprep.subr.bf16.mxu0 %v2375_v25 }
 0x449   :  { %1876 = vmatpush3.bf16.msra.mxu0 %v2502_v30 }
 0x44a   :  { %1877 = vmatprep.subr.bf16.mxu0 %v2375_v25 }
 0x44d   :  { %1878 = vmatpush3.bf16.msra.mxu0 %v2517_v34 }
 0x44e   :  { %1879 = vmatprep.subr.bf16.mxu0 %v2375_v25 }
 0x451   :  { %1880 = vmatpush3.bf16.msra.mxu0 %v2523_v36 }
 0x452   :  { %1905 = vmatprep.subr.bf16.mxu0 %v2375_v25 }
 0x507   :  { %v422_v19 = vpop.f32.mrb[8].mxu0 }
 0x508   :  { %v428_v20 = vadd.f32 %v422_v19, %v218_v17  ;;  %v1843_v21 = vpop.f32.mrb[9].mxu0  ;;  %v437_v38 = vadd.f32 %v2514_v31, %v422_v19 }
 0x509   :  { %v425_v22 = vpop.f32.mrb[10].mxu0 }
 0x50a   :  { %v1549_v23 = vmul.f32 -1.442695, %v428_v20  ;;  %v1844_v32 = vpop.f32.mrb[11].mxu0 }
 0x50c   :  { %2165 = vpow2.f32 %v1549_v23 }
 0x516   :  { %v2166_v33 = vpop.eup %2165 }
 0x517   :  { %v432_v35 = vadd.f32 1.0, %v2166_v33 }
 0x519   :  { %2167 = vrcp.f32 %v432_v35 }
 0x523   :  { %v2168_v37 = vpop.eup %2167 }
 0x524   :  { %435 = vrot.lane.b32.xlu0 %v2168_v37, %s2368_s7 }
 0x528   :  { %443 = vrot.lane.b32.xlu0 %v2168_v37, %s2374_s13 }
 0x596   :  { %v436_v40 = vpop.permute.xlu0 %435 }
 0x597   :  { %v438_v41 = vmul.f32 %v437_v38, %v436_v40 }
 0x599   :  { %v439_v15 = vadd.f32 %v438_v41, %v218_v17 }
 0x59a   :  { %v444_v48 = vpop.permute.xlu0 %443 }
 0x59b   :  { %2169 = vtanh.f32 %v439_v15 }
 0x5a5   :  { %v2170_v42 = vpop.eup %2169 }
 0x5a6   :  { %441 = vrot.lane.b32.xlu1 %v2170_v42, %s2368_s7 }
 0x618   :  { %v442_v43 = vpop.permute.xlu1 %441 }
 0x619   :  { %v445_v47 = vsub.f32 %v382_v46, %v442_v43 }
 0x61b   :  { %v446_v49 = vmul.f32 %v445_v47, %v444_v48 }
 0x61d   :  { %v2618_v50 = vadd.f32 %v446_v49, %v442_v43 }
 0x61f   :  { %v1551_v51 = vpack.c.bf16 %v2618_v50, %v2618_v50  ;;  %v448_v3 = vsel %vm68_vm1, %v2618_v50, 0.0 }
 0x621   :  { %1862 = vmatmul.mubr.msk.bf16.vlgmr.msra.gmra.mrb[4].mxu1 %vm2540_vm2, %v1551_v51 }
 0x622   :  { %1886 = vmatpush3.bf16.msra.mxu1 %v2473_v24  ;;  %1901 = vmatprep.mubr.msk.bf16.mxu1 %vm2376_vm0, %v2375_v25 }
 0x623   :  { %1887 = vmatprep.subr.bf16.mxu1 %v2375_v25 }
 0x626   :  { %1888 = vmatpush3.bf16.msra.mxu1 %v2478_v26 }
 0x627   :  { %1889 = vmatprep.subr.bf16.mxu1 %v2375_v25 }
 0x62a   :  { %1890 = vmatpush3.bf16.msra.mxu1 %v2484_v27 }
 0x62b   :  { %1891 = vmatprep.subr.bf16.mxu1 %v2375_v25 }
 0x62e   :  { %1892 = vmatpush3.bf16.msra.mxu1 %v2490_v28 }
 0x62f   :  { %1893 = vmatprep.subr.bf16.mxu1 %v2375_v25 }
 0x632   :  { %1894 = vmatpush3.bf16.msra.mxu1 %v2496_v29 }
 0x633   :  { %1895 = vmatprep.subr.bf16.mxu1 %v2375_v25 }
 0x636   :  { %1896 = vmatpush3.bf16.msra.mxu1 %v2502_v30 }
 0x637   :  { %1897 = vmatprep.subr.bf16.mxu1 %v2375_v25 }
 0x63a   :  { %1898 = vmatpush3.bf16.msra.mxu1 %v2517_v34 }
 0x63b   :  { %1899 = vmatprep.subr.bf16.mxu1 %v2375_v25 }
 0x63e   :  { %1900 = vmatpush3.bf16.msra.mxu1 %v2523_v36 }
 0x63f   :  { %1925 = vmatprep.subr.bf16.mxu1 %v2375_v25 }
 0x6f4   :  { %v488_v53 = vpop.f32.mrb[4].mxu1 }
 0x6f5   :  { %v494_v54 = vadd.f32 %v488_v53, %v221_v52  ;;  %v1863_v55 = vpop.f32.mrb[5].mxu1  ;;  %v503_v62 = vadd.f32 %v2514_v31, %v488_v53 }
 0x6f6   :  { %v491_v56 = vpop.f32.mrb[6].mxu1 }
 0x6f7   :  { %v1553_v57 = vmul.f32 -1.442695, %v494_v54  ;;  %v1864_v58 = vpop.f32.mrb[7].mxu1  ;;  %v2137_v56 = vld [vmem:[#allocation7 + $0x40] sm:$0xff]  }
 0x6f9   :  { %2171 = vpow2.f32 %v1553_v57 }
 0x703   :  { %v2172_v59 = vpop.eup %2171 }
 0x704   :  { %v498_v60 = vadd.f32 1.0, %v2172_v59 }
 0x706   :  { %2173 = vrcp.f32 %v498_v60 }
 0x710   :  { %v2174_v61 = vpop.eup %2173 }
 0x711   :  { %501 = vrot.lane.b32.xlu1 %v2174_v61, %s2368_s7 }
 0x715   :  { %509 = vrot.lane.b32.xlu1 %v2174_v61, %s2374_s13 }
 0x783   :  { %v502_v63 = vpop.permute.xlu1 %501 }
 0x784   :  { %v504_v0 = vmul.f32 %v503_v62, %v502_v63 }
 0x786   :  { %v505_v18 = vadd.f32 %v504_v0, %v221_v52 }
 0x787   :  { %v510_v9 = vpop.permute.xlu1 %509 }
 0x788   :  { %2175 = vtanh.f32 %v505_v18  ;;  %v2138_v18 = vld [vmem:[#allocation7 + $0x48] sm:$0xff]  }
 0x792   :  { %v2176_v1 = vpop.eup %2175 }
 0x793   :  { %507 = vrot.lane.b32.xlu0 %v2176_v1, %s2368_s7  ;;  %v1620_v1 = vpack.c.bf16 %v2585_v13, %v2535_v44  ;;  %v2143_v44 = vld [vmem:[#allocation7 + $0x70] sm:$0xff]   ;;  %v2144_v13 = vld [vmem:[#allocation7 + $0x78] sm:$0xff]  }
 0x805   :  { %v508_v2 = vpop.permute.xlu0 %507 }
 0x806   :  { %v511_v8 = vsub.f32 %v448_v3, %v508_v2  ;;  %v2140_v3 = vld [vmem:[#allocation7 + $0x58] sm:$0xff]  }
 0x808   :  { %v512_v10 = vmul.f32 %v511_v8, %v510_v9  ;;  %v2141_v8 = vld [vmem:[#allocation7 + $0x60] sm:$0xff]   ;;  %v2142_v9 = vld [vmem:[#allocation7 + $0x68] sm:$0xff]  }
 0x80a   :  { %v2651_v11 = vadd.f32 %v512_v10, %v508_v2  ;;  %v2139_v2 = vld [vmem:[#allocation7 + $0x50] sm:$0xff]  }
 0x80c   :  { %v1555_v12 = vpack.c.bf16 %v2651_v11, %v2651_v11  ;;  %v514_v42 = vsel %vm68_vm1, %v2651_v11, 0.0  ;;  %v1623_v10 = vpack.c.bf16 %v2651_v11, %v2618_v50 }
 0x80e   :  { %1882 = vmatmul.mubr.msk.bf16.vlgmr.msra.gmra.mrb[12].mxu0 %vm2540_vm2, %v1555_v12 }
 0x80f   :  { %1906 = vmatpush3.bf16.msra.mxu0 %v2473_v24  ;;  %1921 = vmatprep.mubr.msk.bf16.mxu0 %vm2376_vm0, %v2375_v25 }
 0x810   :  { %1907 = vmatprep.subr.bf16.mxu0 %v2375_v25 }
 0x813   :  { %1908 = vmatpush3.bf16.msra.mxu0 %v2478_v26 }
 0x814   :  { %1909 = vmatprep.subr.bf16.mxu0 %v2375_v25 }
 0x817   :  { %1910 = vmatpush3.bf16.msra.mxu0 %v2484_v27 }
 0x818   :  { %1911 = vmatprep.subr.bf16.mxu0 %v2375_v25 }
 0x81b   :  { %1912 = vmatpush3.bf16.msra.mxu0 %v2490_v28 }
 0x81c   :  { %1913 = vmatprep.subr.bf16.mxu0 %v2375_v25 }
 0x81f   :  { %1914 = vmatpush3.bf16.msra.mxu0 %v2496_v29 }
 0x820   :  { %1915 = vmatprep.subr.bf16.mxu0 %v2375_v25 }
 0x823   :  { %1916 = vmatpush3.bf16.msra.mxu0 %v2502_v30 }
 0x824   :  { %1917 = vmatprep.subr.bf16.mxu0 %v2375_v25 }
 0x827   :  { %1918 = vmatpush3.bf16.msra.mxu0 %v2517_v34 }
 0x828   :  { %1919 = vmatprep.subr.bf16.mxu0 %v2375_v25 }
 0x82b   :  { %1920 = vmatpush3.bf16.msra.mxu0 %v2523_v36 }
 0x82c   :  { %1945 = vmatprep.subr.bf16.mxu0 %v2137_v56 }
 0x8e1   :  { %v554_v17 = vpop.f32.mrb[12].mxu0 }
 0x8e2   :  { %v560_v19 = vadd.f32 %v554_v17, %v226_v16  ;;  %v1883_v20 = vpop.f32.mrb[13].mxu0  ;;  %v569_v37 = vadd.f32 %v2514_v31, %v554_v17 }
 0x8e3   :  { %v557_v21 = vpop.f32.mrb[14].mxu0 }
 0x8e4   :  { %v1557_v22 = vmul.f32 -1.442695, %v560_v19  ;;  %v1884_v23 = vpop.f32.mrb[15].mxu0 }
 0x8e6   :  { %2177 = vpow2.f32 %v1557_v22 }
 0x8f0   :  { %v2178_v32 = vpop.eup %2177 }
 0x8f1   :  { %v564_v33 = vadd.f32 1.0, %v2178_v32 }
 0x8f3   :  { %2179 = vrcp.f32 %v564_v33  ;;  %v2741_v33 = vld [vmem:[%s3037_s3 + $0x1] ss:$0 sm:$0xff] }
 0x8fd   :  { %v2180_v35 = vpop.eup %2179 }
 0x8fe   :  { %567 = vrot.lane.b32.xlu0 %v2180_v35, %s2368_s7 }
 0x902   :  { %575 = vrot.lane.b32.xlu0 %v2180_v35, %s2374_s13 }
 0x970   :  { %v568_v38 = vpop.permute.xlu0 %567 }
 0x971   :  { %v570_v40 = vmul.f32 %v569_v37, %v568_v38 }
 0x973   :  { %v571_v5 = vadd.f32 %v570_v40, %v226_v16  ;;  %v234_v16 = vadd.f32 %v2574_v4, %v2462_v14 }
 0x974   :  { %v576_v46 = vpop.permute.xlu0 %575 }
 0x975   :  { %2181 = vtanh.f32 %v571_v5 }
 0x97f   :  { %v2182_v41 = vpop.eup %2181 }
 0x980   :  { %573 = vrot.lane.b32.xlu1 %v2182_v41, %s2368_s7 }
 0x9f2   :  { %v574_v15 = vpop.permute.xlu1 %573 }
 0x9f3   :  { %v577_v43 = vsub.f32 %v514_v42, %v574_v15 }
 0x9f5   :  { %v578_v47 = vmul.f32 %v577_v43, %v576_v46 }
 0x9f7   :  { %v2683_v48 = vadd.f32 %v578_v47, %v574_v15 }
 0x9f9   :  { %v1559_v49 = vpack.c.bf16 %v2683_v48, %v2683_v48  ;;  %v580_v59 = vsel %vm68_vm1, %v2683_v48, 0.0 }
 0x9fb   :  { %1902 = vmatmul.mubr.msk.bf16.vlgmr.msra.gmra.mrb[8].mxu1 %vm2540_vm2, %v1559_v49  ;;  %v2754_v49 = vld [vmem:[#allocation9 + $0x40] sm:$0xff]  }
 0x9fc   :  { %1926 = vmatpush3.bf16.msra.mxu1 %v2473_v24  ;;  %1941 = vmatprep.mubr.msk.bf16.mxu1 %vm2376_vm0, %v2375_v25  ;;  %v229_v24 = vadd.f32 %v2462_v14, %v2580_v7 }
 0x9fd   :  { %1927 = vmatprep.subr.bf16.mxu1 %v2375_v25 }
 0xa00   :  { %1928 = vmatpush3.bf16.msra.mxu1 %v2478_v26 }
 0xa01   :  { %1929 = vmatprep.subr.bf16.mxu1 %v2375_v25 }
 0xa04   :  { %1930 = vmatpush3.bf16.msra.mxu1 %v2484_v27 }
 0xa05   :  { %1931 = vmatprep.subr.bf16.mxu1 %v2375_v25 }
 0xa08   :  { %1932 = vmatpush3.bf16.msra.mxu1 %v2490_v28 }
 0xa09   :  { %1933 = vmatprep.subr.bf16.mxu1 %v2375_v25 }
 0xa0c   :  { %1934 = vmatpush3.bf16.msra.mxu1 %v2496_v29 }
 0xa0d   :  { %1935 = vmatprep.subr.bf16.mxu1 %v2375_v25 }
 0xa10   :  { %1936 = vmatpush3.bf16.msra.mxu1 %v2502_v30 }
 0xa11   :  { %1937 = vmatprep.subr.bf16.mxu1 %v2375_v25 }
 0xa14   :  { %1938 = vmatpush3.bf16.msra.mxu1 %v2517_v34 }
 0xa15   :  { %1939 = vmatprep.subr.bf16.mxu1 %v2375_v25 }
 0xa18   :  { %1940 = vmatpush3.bf16.msra.mxu1 %v2523_v36 }
 0xa19   :  { %1969 = vmatprep.subr.bf16.mxu1 %v2375_v25 }
 0xace   :  { %v620_v26 = vpop.f32.mrb[8].mxu1 }
 0xacf   :  { %v626_v27 = vadd.f32 %v620_v26, %v229_v24  ;;  %v1903_v28 = vpop.f32.mrb[9].mxu1  ;;  %v635_v36 = vadd.f32 %v2514_v31, %v620_v26  ;;  %v2758_v26 = vld [vmem:[#allocation9 + $0x48] sm:$0xff]  }
 0xad0   :  { %v623_v29 = vpop.f32.mrb[10].mxu1  ;;  %v2767_v28 = vld [vmem:[#allocation9 + $0x58] sm:$0xff]  }
 0xad1   :  { %v1561_v51 = vmul.f32 -1.442695, %v626_v27  ;;  %v1904_v52 = vpop.f32.mrb[11].mxu1  ;;  %v2763_v27 = vld [vmem:[#allocation9 + $0x50] sm:$0xff]   ;;  %v2771_v29 = vld [vmem:[#allocation9 + $0x60] sm:$0xff]  }
 0xad2   :  { %v2780_v52 = vld [vmem:[#allocation9 + $0x68] sm:$0xff]  }
 0xad3   :  { %2183 = vpow2.f32 %v1561_v51  ;;  %v2778_v51 = vld [vmem:[%s3038_s4 + $0x1] ss:$0 sm:$0xff]  ;;  %s2377_s4 = smov [#allocation10]  }
 0xad4   :  { %s1496_s19 = sshll.u32 %s2377_s4, 4  ;;  %s1497_s19 = int_to_ptr.vmem [resolvable:$true] %s1496_s19 }
 0xad5   :  { %s2315_s23 = scalar_lea.vmem %s1497_s19, 1024  ;;  %p2320_p11 = scmp.lt.s32.totalorder %s1497_s19, %s1497_s19 }
 0xad6   :  { %p2316_p10 = scmp.ne.s32.totalorder %s1497_s19, %s2315_s23  ;;  %p2321_p12 = scmp.lt.s32.totalorder %s2315_s23, %s2315_s23 }
 0xad8   :  { %p2322_p13 = por %p2321_p12, %p2320_p11 }
 0xada   :  { %p2323_p0 = pnand %p2322_p13, %p2316_p10 }
 0xadd   :  { %v2184_v30 = vpop.eup %2183 }
 0xade   :  { %v630_v53 = vadd.f32 1.0, %v2184_v30 }
 0xae0   :  { %2185 = vrcp.f32 %v630_v53 }
 0xaea   :  { %v2186_v34 = vpop.eup %2185 }
 0xaeb   :  { %633 = vrot.lane.b32.xlu1 %v2186_v34, %s2368_s7 }
 0xaef   :  { %641 = vrot.lane.b32.xlu1 %v2186_v34, %s2374_s13  ;;  %v2785_v34 = vld [vmem:[#allocation9 + $0x70] sm:$0xff]  }
 0xb5d   :  { %v634_v54 = vpop.permute.xlu1 %633 }
 0xb5e   :  { %v636_v55 = vmul.f32 %v635_v36, %v634_v54  ;;  %v2789_v54 = vld [vmem:[#allocation9 + $0x78] sm:$0xff]  }
 0xb60   :  { %v637_v7 = vadd.f32 %v636_v55, %v229_v24 }
 0xb61   :  { %v642_v61 = vpop.permute.xlu1 %641 }
 0xb62   :  { %2187 = vtanh.f32 %v637_v7 }
 0xb6c   :  { %v2188_v57 = vpop.eup %2187 }
 0xb6d   :  { %639 = vrot.lane.b32.xlu0 %v2188_v57, %s2368_s7 }
 0xbdf   :  { %v640_v58 = vpop.permute.xlu0 %639 }
 0xbe0   :  { %v643_v60 = vsub.f32 %v580_v59, %v640_v58 }
 0xbe2   :  { %v644_v62 = vmul.f32 %v643_v60, %v642_v61 }
 0xbe4   :  { %v2716_v63 = vadd.f32 %v644_v62, %v640_v58 }
 0xbe6   :  { %v1563_v0 = vpack.c.bf16 %v2716_v63, %v2716_v63  ;;  %v1626_v12 = vpack.c.bf16 %v2716_v63, %v2683_v48 }
 0xbe8   :  { %1922 = vmatmul.mubr.msk.bf16.vlgmr.msra.gmra.mrb[16].mxu0 %vm2540_vm2, %v1563_v0 }
 0xbe9   :  { %1946 = vmatpush3.bf16.msra.mxu0 %v2137_v56  ;;  %1961 = vmatprep.mubr.msk.bf16.mxu0 %vm2540_vm2, %v1620_v1  ;;  %v646_v56 = vsel %vm68_vm1, %v2716_v63, 0.0 }
 0xbea   :  { %1947 = vmatprep.subr.bf16.mxu0 %v2138_v18 }
 0xbed   :  { %1948 = vmatpush3.bf16.msra.mxu0 %v2138_v18 }
 0xbee   :  { %1949 = vmatprep.subr.bf16.mxu0 %v2139_v2 }
 0xbf1   :  { %1950 = vmatpush3.bf16.msra.mxu0 %v2139_v2 }
 0xbf2   :  { %1951 = vmatprep.subr.bf16.mxu0 %v2140_v3 }
 0xbf5   :  { %1952 = vmatpush3.bf16.msra.mxu0 %v2140_v3 }
 0xbf6   :  { %1953 = vmatprep.subr.bf16.mxu0 %v2141_v8 }
 0xbf9   :  { %1954 = vmatpush3.bf16.msra.mxu0 %v2141_v8  ;;  %v237_v8 = vadd.f32 %v2578_v6, %v2462_v14 }
 0xbfa   :  { %1955 = vmatprep.subr.bf16.mxu0 %v2142_v9 }
 0xbfd   :  { %1956 = vmatpush3.bf16.msra.mxu0 %v2142_v9 }
 0xbfe   :  { %1957 = vmatprep.subr.bf16.mxu0 %v2143_v44 }
 0xc01   :  { %1958 = vmatpush3.bf16.msra.mxu0 %v2143_v44 }
 0xc02   :  { %1959 = vmatprep.subr.bf16.mxu0 %v2144_v13 }
 0xc05   :  { %1960 = vmatpush3.bf16.msra.mxu0 %v2144_v13 }
 0xc06   :  { %1989 = vmatprep.subr.bf16.mxu0 %v2375_v25 }
 0xc08   :  { %1962 = vmatmul.mubr.msk.bf16.vlgmr.msra.gmra.mrb[20].mxu0 %vm2540_vm2, %v1623_v10 }
 0xc09   :  { %1965 = vmatprep.mubr.msk.bf16.mxu0 %vm2540_vm2, %v1626_v12  ;;  %1990 = vmatpush3.bf16.msra.mxu0 %v2754_v49 }
 0xc0a   :  { %1991 = vmatprep.subr.bf16.mxu0 %v2375_v25 }
 0xc0d   :  { %1992 = vmatpush3.bf16.msra.mxu0 %v2758_v26 }
 0xc0e   :  { %1993 = vmatprep.subr.bf16.mxu0 %v2375_v25 }
 0xc11   :  { %1994 = vmatpush3.bf16.msra.mxu0 %v2763_v27 }
 0xc12   :  { %1995 = vmatprep.subr.bf16.mxu0 %v2375_v25 }
 0xc15   :  { %1996 = vmatpush3.bf16.msra.mxu0 %v2767_v28 }
 0xc16   :  { %1997 = vmatprep.subr.bf16.mxu0 %v2375_v25 }
 0xc19   :  { %1998 = vmatpush3.bf16.msra.mxu0 %v2771_v29 }
 0xc1a   :  { %1999 = vmatprep.subr.bf16.mxu0 %v2375_v25 }
 0xc1d   :  { %2000 = vmatpush3.bf16.msra.mxu0 %v2780_v52 }
 0xc1e   :  { %2001 = vmatprep.subr.bf16.mxu0 %v2375_v25 }
 0xc21   :  { %2002 = vmatpush3.bf16.msra.mxu0 %v2785_v34 }
 0xc22   :  { %2003 = vmatprep.subr.bf16.mxu0 %v2375_v25 }
 0xc25   :  { %2004 = vmatpush3.bf16.msra.mxu0 %v2789_v54 }
 0xc26   :  { %2029 = vmatprep.subr.bf16.mxu0 %v2375_v25 }
 0xcbb   :  { %v686_v17 = vpop.f32.mrb[16].mxu0 }
 0xcbc   :  { %v692_v19 = vadd.f32 %v686_v17, %v234_v16  ;;  %v1923_v20 = vpop.f32.mrb[17].mxu0  ;;  %v701_v43 = vadd.f32 %v2514_v31, %v686_v17 }
 0xcbd   :  { %v689_v21 = vpop.f32.mrb[18].mxu0 }
 0xcbe   :  { %v1565_v22 = vmul.f32 -1.442695, %v692_v19  ;;  %v1924_v50 = vpop.f32.mrb[19].mxu0 }
 0xcc0   :  { %2189 = vpow2.f32 %v1565_v22 }
 0xcca   :  { %v2190_v11 = vpop.eup %2189 }
 0xccb   :  { %v696_v23 = vadd.f32 1.0, %v2190_v11 }
 0xccd   :  { %2191 = vrcp.f32 %v696_v23 }
 0xcd7   :  { %v2192_v32 = vpop.eup %2191 }
 0xcd8   :  { %699 = vrot.lane.b32.xlu0 %v2192_v32, %s2368_s7 }
 0xcdb   :  { %v2743_v35 = vpop.f32.mrb[20].mxu0 }
 0xcdc   :  { %v925_v4 = vpop.f32.mrb[21].mxu0 }
 0xcdd   :  { %v926_v37 = vadd.f32 %v2741_v33, %v925_v4  ;;  %v2746_v38 = vpop.f32.mrb[22].mxu0 }
 0xcde   :  { %v2748_v40 = vpop.f32.mrb[23].mxu0 }
 0xcdf   :  { %v1582_v5 = vmul.f32 -1.442695, %v926_v37  ;;  %v929_v21 = vadd.f32 %v2741_v33, %v2748_v40 }
 0xce1   :  { %2193 = vpow2.f32 %v1582_v5 }
 0xceb   :  { %v2194_v41 = vpop.eup %2193 }
 0xcec   :  { %v969_v15 = vadd.f32 1.0, %v2194_v41 }
 0xcee   :  { %2195 = vrcp.f32 %v969_v15 }
 0xcf8   :  { %v2196_v42 = vpop.eup %2195 }
 0xcf9   :  { %972 = vrot.lane.b32.xlu1 %v2196_v42, %s2368_s7 }
 0xcfd   :  { %707 = vrot.lane.b32.xlu1 %v2192_v32, %s2374_s13 }
 0xd01   :  { %980 = vrot.lane.b32.xlu1 %v2196_v42, %s2374_s13 }
 0xd4a   :  { %v700_v46 = vpop.permute.xlu0 %699 }
 0xd4b   :  { %v702_v47 = vmul.f32 %v701_v43, %v700_v46 }
 0xd4d   :  { %v703_v48 = vadd.f32 %v702_v47, %v234_v16 }
 0xd4f   :  { %2197 = vtanh.f32 %v703_v48 }
 0xd59   :  { %v2198_v24 = vpop.eup %2197 }
 0xd5a   :  { %705 = vrot.lane.b32.xlu0 %v2198_v24, %s2368_s7 }
 0xd6b   :  { %v973_v30 = vpop.permute.xlu1 %972 }
 0xd6c   :  { %v975_v53 = vmul.f32 %v2778_v51, %v973_v30 }
 0xd6e   :  { %v976_v36 = vadd.f32 %v975_v53, %v926_v37 }
 0xd6f   :  { %v708_v58 = vpop.permute.xlu1 %707 }
 0xd70   :  { %2199 = vtanh.f32 %v976_v36 }
 0xd73   :  { %v981_v0 = vpop.permute.xlu1 %980 }
 0xd7a   :  { %v2200_v55 = vpop.eup %2199 }
 0xd7b   :  { %978 = vrot.lane.b32.xlu0 %v2200_v55, %s2368_s7 }
 0xdcc   :  { %v706_v7 = vpop.permute.xlu0 %705 }
 0xdcd   :  { %v709_v57 = vsub.f32 %v646_v56, %v706_v7 }
 0xdcf   :  { %v710_v59 = vmul.f32 %v709_v57, %v708_v58 }
 0xdd1   :  { %v2797_v60 = vadd.f32 %v710_v59, %v706_v7 }
 0xdd3   :  { %v1567_v61 = vpack.c.bf16 %v2797_v60, %v2797_v60 }
 0xdd5   :  { %1942 = vmatmul.mubr.msk.bf16.vlgmr.msra.gmra.mrb[12].mxu1 %vm2540_vm2, %v1567_v61 }
 0xdd6   :  { %1970 = vmatpush3.bf16.msra.mxu1 %v2754_v49  ;;  %1985 = vmatprep.mubr.msk.bf16.mxu1 %vm2376_vm0, %v2375_v25 }
 0xdd7   :  { %1971 = vmatprep.subr.bf16.mxu1 %v2375_v25 }
 0xdda   :  { %1972 = vmatpush3.bf16.msra.mxu1 %v2758_v26 }
 0xddb   :  { %1973 = vmatprep.subr.bf16.mxu1 %v2375_v25 }
 0xdde   :  { %1974 = vmatpush3.bf16.msra.mxu1 %v2763_v27 }
 0xddf   :  { %1975 = vmatprep.subr.bf16.mxu1 %v2375_v25 }
 0xde2   :  { %1976 = vmatpush3.bf16.msra.mxu1 %v2767_v28 }
 0xde3   :  { %1977 = vmatprep.subr.bf16.mxu1 %v2375_v25 }
 0xde6   :  { %1978 = vmatpush3.bf16.msra.mxu1 %v2771_v29 }
 0xde7   :  { %1979 = vmatprep.subr.bf16.mxu1 %v2375_v25 }
 0xdea   :  { %1980 = vmatpush3.bf16.msra.mxu1 %v2780_v52 }
 0xdeb   :  { %1981 = vmatprep.subr.bf16.mxu1 %v2375_v25 }
 0xded   :  { %v979_v62 = vpop.permute.xlu0 %978 }
 0xdee   :  { %v982_v63 = vsub.f32 0.0, %v979_v62  ;;  %1982 = vmatpush3.bf16.msra.mxu1 %v2785_v34 }
 0xdef   :  { %1983 = vmatprep.subr.bf16.mxu1 %v2375_v25 }
 0xdf0   :  { %v983_v18 = vmul.f32 %v982_v63, %v981_v0 }
 0xdf2   :  { %v984_v1 = vadd.f32 %v983_v18, %v979_v62  ;;  %1984 = vmatpush3.bf16.msra.mxu1 %v2789_v54 }
 0xdf3   :  { %2009 = vmatprep.subr.bf16.mxu1 %v2375_v25 }
 0xdf4   :  { %v1592_v2 = vpack.c.bf16 %v984_v1, %v984_v1  ;;  %v2823_v3 = vsel %vm68_vm1, %v984_v1, 0.0 }
 0xdf5   :  { %986 = vst [vmem:[#allocation10] sm:$0xff] %v2823_v3 }
 0xdf6   :  { %1986 = vmatmul.mubr.msk.bf16.vlgmr.msra.gmra.mrb[16].mxu1 %vm2540_vm2, %v1592_v2 }
 0xdf7   :  { %2010 = vmatpush3.bf16.msra.mxu1 %v2754_v49  ;;  %2025 = vmatprep.mubr.msk.bf16.mxu1 %vm2376_vm0, %v2375_v25 }
 0xdf8   :  { %2011 = vmatprep.subr.bf16.mxu1 %v2375_v25 }
 0xdfb   :  { %2012 = vmatpush3.bf16.msra.mxu1 %v2758_v26 }
 0xdfc   :  { %2013 = vmatprep.subr.bf16.mxu1 %v2375_v25 }
 0xdff   :  { %2014 = vmatpush3.bf16.msra.mxu1 %v2763_v27 }
 0xe00   :  { %2015 = vmatprep.subr.bf16.mxu1 %v2375_v25 }
 0xe03   :  { %2016 = vmatpush3.bf16.msra.mxu1 %v2767_v28 }
 0xe04   :  { %2017 = vmatprep.subr.bf16.mxu1 %v2375_v25 }
 0xe07   :  { %2018 = vmatpush3.bf16.msra.mxu1 %v2771_v29 }
 0xe08   :  { %2019 = vmatprep.subr.bf16.mxu1 %v2375_v25 }
 0xe0b   :  { %2020 = vmatpush3.bf16.msra.mxu1 %v2780_v52 }
 0xe0c   :  { %2021 = vmatprep.subr.bf16.mxu1 %v2375_v25 }
 0xe0f   :  { %2022 = vmatpush3.bf16.msra.mxu1 %v2785_v34 }
 0xe10   :  { %2023 = vmatprep.subr.bf16.mxu1 %v2375_v25 }
 0xe13   :  { %2024 = vmatpush3.bf16.msra.mxu1 %v2789_v54 }
 0xe14   :  { %2049 = vmatprep.subr.bf16.mxu1 %v2375_v25 }
 0xea8   :  { %v752_v9 = vpop.f32.mrb[12].mxu1 }
 0xea9   :  { %v758_v44 = vadd.f32 %v752_v9, %v237_v8  ;;  %v1943_v13 = vpop.f32.mrb[13].mxu1  ;;  %v767_v5 = vadd.f32 %v2514_v31, %v752_v9  ;;  %v712_v31 = vsel %vm68_vm1, %v2797_v60, 0.0 }
 0xeaa   :  { %v755_v10 = vpop.f32.mrb[14].mxu1 }
 0xeab   :  { %v1569_v12 = vmul.f32 -1.442695, %v758_v44  ;;  %v1944_v16 = vpop.f32.mrb[15].mxu1 }
 0xead   :  { %2201 = vpow2.f32 %v1569_v12 }
 0xeb7   :  { %v2202_v17 = vpop.eup %2201 }
 0xeb8   :  { %v762_v19 = vadd.f32 1.0, %v2202_v17 }
 0xeba   :  { %2203 = vrcp.f32 %v762_v19 }
 0xec4   :  { %v2204_v20 = vpop.eup %2203 }
 0xec5   :  { %765 = vrot.lane.b32.xlu0 %v2204_v20, %s2368_s7 }
 0xec9   :  { %v1071_v22 = vpop.f32.mrb[16].mxu1 }
 0xeca   :  { %v1077_v50 = vadd.f32 %v1071_v22, %v929_v21  ;;  %v1987_v11 = vpop.f32.mrb[17].mxu1  ;;  %v1086_v43 = vadd.f32 %v2778_v51, %v1071_v22 }
 0xecb   :  { %v1074_v14 = vpop.f32.mrb[18].mxu1 }
 0xecc   :  { %v1594_v6 = vmul.f32 -1.442695, %v1077_v50  ;;  %v1988_v23 = vpop.f32.mrb[19].mxu1 }
 0xece   :  { %2205 = vpow2.f32 %v1594_v6 }
 0xed8   :  { %v2206_v32 = vpop.eup %2205 }
 0xed9   :  { %v1081_v4 = vadd.f32 1.0, %v2206_v32 }
 0xedb   :  { %2207 = vrcp.f32 %v1081_v4 }
 0xee5   :  { %v2208_v37 = vpop.eup %2207 }
 0xee6   :  { %1084 = vrot.lane.b32.xlu1 %v2208_v37, %s2368_s7 }
 0xeea   :  { %773 = vrot.lane.b32.xlu1 %v2204_v20, %s2374_s13 }
 0xeee   :  { %1092 = vrot.lane.b32.xlu1 %v2208_v37, %s2374_s13 }
 0xf37   :  { %v766_v40 = vpop.permute.xlu0 %765 }
 0xf38   :  { %v768_v41 = vmul.f32 %v767_v5, %v766_v40  ;;  %v937_v5 = vadd.f32 %v2746_v38, %v2741_v33 }
 0xf3a   :  { %v769_v15 = vadd.f32 %v768_v41, %v237_v8 }
 0xf3c   :  { %2209 = vtanh.f32 %v769_v15 }
 0xf46   :  { %v2210_v42 = vpop.eup %2209 }
 0xf47   :  { %771 = vrot.lane.b32.xlu0 %v2210_v42, %s2368_s7 }
 0xf58   :  { %v1085_v46 = vpop.permute.xlu1 %1084 }
 0xf59   :  { %v1087_v47 = vmul.f32 %v1086_v43, %v1085_v46 }
 0xf5b   :  { %v1088_v48 = vadd.f32 %v1087_v47, %v929_v21 }
 0xf5c   :  { %v774_v36 = vpop.permute.xlu1 %773 }
 0xf5d   :  { %2211 = vtanh.f32 %v1088_v48 }
 0xf60   :  { %v1093_v59 = vpop.permute.xlu1 %1092 }
 0xf67   :  { %v2212_v24 = vpop.eup %2211 }
 0xf68   :  { %1090 = vrot.lane.b32.xlu0 %v2212_v24, %s2368_s7 }
 0xfb9   :  { %v772_v30 = vpop.permute.xlu0 %771 }
 0xfba   :  { %v775_v53 = vsub.f32 %v712_v31, %v772_v30 }
 0xfbc   :  { %v776_v55 = vmul.f32 %v775_v53, %v774_v36 }
 0xfbe   :  { %v777_v7 = vadd.f32 %v776_v55, %v772_v30 }
 0xfc0   :  { %v1629_v56 = vpack.c.bf16 %v777_v7, %v2797_v60 }
 0xfc2   :  { %1966 = vmatmul.mubr.msk.bf16.gmra.mrb[24].mxu0 %vm2540_vm2, %v1629_v56 }
 0xfc3   :  { %2005 = vmatprep.mubr.msk.bf16.mxu0 %vm2376_vm0, %v2375_v25 }
 0xfda   :  { %v1091_v57 = vpop.permute.xlu0 %1090 }
 0xfdb   :  { %v1094_v58 = vsub.f32 %v2823_v3, %v1091_v57  ;;  %v934_v3 = vadd.f32 %v2743_v35, %v2741_v33 }
 0xfdd   :  { %v1095_v61 = vmul.f32 %v1094_v58, %v1093_v59 }
 0xfdf   :  { %v1096_v62 = vadd.f32 %v1095_v61, %v1091_v57 }
 0xfe1   :  { %v1596_v63 = vpack.c.bf16 %v1096_v62, %v1096_v62  ;;  %v1097_v0 = vsel %vm68_vm1, %v1096_v62, 0.0 }
 0xfe2   :  { %1099 = vst [vmem:[#allocation10 + $0x8] sm:$0xff] %v1097_v0 }
 0xfe3   :  { %2006 = vmatmul.mubr.msk.bf16.vlgmr.msra.gmra.mrb[28].mxu0 %vm2540_vm2, %v1596_v63 }
 0xfe4   :  { %2030 = vmatpush3.bf16.msra.mxu0 %v2754_v49  ;;  %2045 = vmatprep.mubr.msk.bf16.mxu0 %vm2376_vm0, %v2375_v25 }
 0xfe5   :  { %2031 = vmatprep.subr.bf16.mxu0 %v2375_v25 }
 0xfe8   :  { %2032 = vmatpush3.bf16.msra.mxu0 %v2758_v26 }
 0xfe9   :  { %2033 = vmatprep.subr.bf16.mxu0 %v2375_v25 }
 0xfec   :  { %2034 = vmatpush3.bf16.msra.mxu0 %v2763_v27 }
 0xfed   :  { %2035 = vmatprep.subr.bf16.mxu0 %v2375_v25 }
 0xff0   :  { %2036 = vmatpush3.bf16.msra.mxu0 %v2767_v28 }
 0xff1   :  { %2037 = vmatprep.subr.bf16.mxu0 %v2375_v25 }
 0xff4   :  { %2038 = vmatpush3.bf16.msra.mxu0 %v2771_v29 }
 0xff5   :  { %2039 = vmatprep.subr.bf16.mxu0 %v2375_v25 }
 0xff8   :  { %2040 = vmatpush3.bf16.msra.mxu0 %v2780_v52 }
 0xff9   :  { %2041 = vmatprep.subr.bf16.mxu0 %v2375_v25 }
 0xffc   :  { %2042 = vmatpush3.bf16.msra.mxu0 %v2785_v34 }
 0xffd   :  { %2043 = vmatprep.subr.bf16.mxu0 %v2375_v25 }
0x1000   :  { %2044 = vmatpush3.bf16.msra.mxu0 %v2789_v54 }
0x1001   :  { %2069 = vmatprep.subr.bf16.mxu0 %v2375_v25 }
0x1095   :  { %v2889_v60 = vpop.f32.mrb[24].mxu0 }
0x1096   :  { %v2891_v18 = vpop.f32.mrb[25].mxu0 }
0x1097   :  { %v2893_v1 = vpop.f32.mrb[26].mxu0  ;;  %v942_v62 = vadd.f32 %v2741_v33, %v2891_v18 }
0x1098   :  { %v2895_v2 = vpop.f32.mrb[27].mxu0 }
0x10b6   :  { %v1136_v8 = vpop.f32.mrb[28].mxu0 }
0x10b7   :  { %v1142_v9 = vadd.f32 %v1136_v8, %v934_v3  ;;  %v2007_v44 = vpop.f32.mrb[29].mxu0  ;;  %v1151_v20 = vadd.f32 %v2778_v51, %v1136_v8 }
0x10b8   :  { %v1139_v13 = vpop.f32.mrb[30].mxu0 }
0x10b9   :  { %v1598_v10 = vmul.f32 -1.442695, %v1142_v9  ;;  %v2008_v12 = vpop.f32.mrb[31].mxu0 }
0x10bb   :  { %2213 = vpow2.f32 %v1598_v10 }
0x10c5   :  { %v2214_v16 = vpop.eup %2213 }
0x10c6   :  { %v1146_v17 = vadd.f32 1.0, %v2214_v16 }
0x10c8   :  { %2215 = vrcp.f32 %v1146_v17 }
0x10d2   :  { %v2216_v19 = vpop.eup %2215 }
0x10d3   :  { %1149 = vrot.lane.b32.xlu0 %v2216_v19, %s2368_s7 }
0x10d7   :  { %1157 = vrot.lane.b32.xlu0 %v2216_v19, %s2374_s13 }
0x1145   :  { %v1150_v21 = vpop.permute.xlu0 %1149 }
0x1146   :  { %v1152_v22 = vmul.f32 %v1151_v20, %v1150_v21 }
0x1148   :  { %v1153_v35 = vadd.f32 %v1152_v22, %v934_v3 }
0x1149   :  { %v1158_v6 = vpop.permute.xlu0 %1157 }
0x114a   :  { %2217 = vtanh.f32 %v1153_v35 }
0x1154   :  { %v2218_v50 = vpop.eup %2217 }
0x1155   :  { %1155 = vrot.lane.b32.xlu1 %v2218_v50, %s2368_s7 }
0x11c7   :  { %v1156_v11 = vpop.permute.xlu1 %1155 }
0x11c8   :  { %v1159_v14 = vsub.f32 %v1097_v0, %v1156_v11 }
0x11ca   :  { %v1160_v23 = vmul.f32 %v1159_v14, %v1158_v6 }
0x11cc   :  { %v1161_v32 = vadd.f32 %v1160_v23, %v1156_v11 }
0x11ce   :  { %v1600_v4 = vpack.c.bf16 %v1161_v32, %v1161_v32  ;;  %v1162_v37 = vsel %vm68_vm1, %v1161_v32, 0.0 }
0x11cf   :  { %1164 = vst [vmem:[#allocation10 + $0x10] sm:$0xff] %v1162_v37 }
0x11d0   :  { %2026 = vmatmul.mubr.msk.bf16.vlgmr.msra.gmra.mrb[20].mxu1 %vm2540_vm2, %v1600_v4 }
0x11d1   :  { %2050 = vmatpush3.bf16.msra.mxu1 %v2754_v49  ;;  %2065 = vmatprep.mubr.msk.bf16.mxu1 %vm2376_vm0, %v2375_v25 }
0x11d2   :  { %2051 = vmatprep.subr.bf16.mxu1 %v2375_v25 }
0x11d5   :  { %2052 = vmatpush3.bf16.msra.mxu1 %v2758_v26 }
0x11d6   :  { %2053 = vmatprep.subr.bf16.mxu1 %v2375_v25 }
0x11d9   :  { %2054 = vmatpush3.bf16.msra.mxu1 %v2763_v27 }
0x11da   :  { %2055 = vmatprep.subr.bf16.mxu1 %v2375_v25 }
0x11dd   :  { %2056 = vmatpush3.bf16.msra.mxu1 %v2767_v28 }
0x11de   :  { %2057 = vmatprep.subr.bf16.mxu1 %v2375_v25 }
0x11e1   :  { %2058 = vmatpush3.bf16.msra.mxu1 %v2771_v29 }
0x11e2   :  { %2059 = vmatprep.subr.bf16.mxu1 %v2375_v25 }
0x11e5   :  { %2060 = vmatpush3.bf16.msra.mxu1 %v2780_v52 }
0x11e6   :  { %2061 = vmatprep.subr.bf16.mxu1 %v2375_v25 }
0x11e9   :  { %2062 = vmatpush3.bf16.msra.mxu1 %v2785_v34 }
0x11ea   :  { %2063 = vmatprep.subr.bf16.mxu1 %v2375_v25 }
0x11ed   :  { %2064 = vmatpush3.bf16.msra.mxu1 %v2789_v54 }
0x11ee   :  { %2089 = vmatprep.subr.bf16.mxu1 %v2375_v25 }
0x12a3   :  { %v1201_v40 = vpop.f32.mrb[20].mxu1 }
0x12a4   :  { %v1207_v41 = vadd.f32 %v1201_v40, %v937_v5  ;;  %v2027_v15 = vpop.f32.mrb[21].mxu1  ;;  %v1216_v30 = vadd.f32 %v2778_v51, %v1201_v40 }
0x12a5   :  { %v1204_v42 = vpop.f32.mrb[22].mxu1 }
0x12a6   :  { %v1602_v43 = vmul.f32 -1.442695, %v1207_v41  ;;  %v2028_v46 = vpop.f32.mrb[23].mxu1 }
0x12a8   :  { %2219 = vpow2.f32 %v1602_v43 }
0x12b2   :  { %v2220_v47 = vpop.eup %2219 }
0x12b3   :  { %v1211_v48 = vadd.f32 1.0, %v2220_v47 }
0x12b5   :  { %2221 = vrcp.f32 %v1211_v48  ;;  %v950_v48 = vadd.f32 %v2889_v60, %v2741_v33 }
0x12bf   :  { %v2222_v24 = vpop.eup %2221 }
0x12c0   :  { %1214 = vrot.lane.b32.xlu1 %v2222_v24, %s2368_s7 }
0x12c4   :  { %1222 = vrot.lane.b32.xlu1 %v2222_v24, %s2374_s13 }
0x1332   :  { %v1215_v31 = vpop.permute.xlu1 %1214 }
0x1333   :  { %v1217_v53 = vmul.f32 %v1216_v30, %v1215_v31 }
0x1335   :  { %v1218_v38 = vadd.f32 %v1217_v53, %v937_v5 }
0x1336   :  { %v1223_v56 = vpop.permute.xlu1 %1222 }
0x1337   :  { %2223 = vtanh.f32 %v1218_v38 }
0x1341   :  { %v2224_v36 = vpop.eup %2223 }
0x1342   :  { %1220 = vrot.lane.b32.xlu0 %v2224_v36, %s2368_s7 }
0x13b4   :  { %v1221_v55 = vpop.permute.xlu0 %1220 }
0x13b5   :  { %v1224_v7 = vsub.f32 %v1162_v37, %v1221_v55 }
0x13b7   :  { %v1225_v57 = vmul.f32 %v1224_v7, %v1223_v56 }
0x13b9   :  { %v1226_v58 = vadd.f32 %v1225_v57, %v1221_v55 }
0x13bb   :  { %v1604_v59 = vpack.c.bf16 %v1226_v58, %v1226_v58  ;;  %v1227_v61 = vsel %vm68_vm1, %v1226_v58, 0.0 }
0x13bc   :  { %1229 = vst [vmem:[#allocation10 + $0x18] sm:$0xff] %v1227_v61 }
0x13bd   :  { %2046 = vmatmul.mubr.msk.bf16.vlgmr.msra.gmra.mrb[32].mxu0 %vm2540_vm2, %v1604_v59 }
0x13be   :  { %2070 = vmatpush3.bf16.msra.mxu0 %v2754_v49  ;;  %2085 = vmatprep.mubr.msk.bf16.mxu0 %vm2376_vm0, %v2375_v25 }
0x13bf   :  { %2071 = vmatprep.subr.bf16.mxu0 %v2375_v25 }
0x13c2   :  { %2072 = vmatpush3.bf16.msra.mxu0 %v2758_v26 }
0x13c3   :  { %2073 = vmatprep.subr.bf16.mxu0 %v2375_v25 }
0x13c6   :  { %2074 = vmatpush3.bf16.msra.mxu0 %v2763_v27 }
0x13c7   :  { %2075 = vmatprep.subr.bf16.mxu0 %v2375_v25 }
0x13ca   :  { %2076 = vmatpush3.bf16.msra.mxu0 %v2767_v28 }
0x13cb   :  { %2077 = vmatprep.subr.bf16.mxu0 %v2375_v25 }
0x13ce   :  { %2078 = vmatpush3.bf16.msra.mxu0 %v2771_v29 }
0x13cf   :  { %2079 = vmatprep.subr.bf16.mxu0 %v2375_v25 }
0x13d2   :  { %2080 = vmatpush3.bf16.msra.mxu0 %v2780_v52 }
0x13d3   :  { %2081 = vmatprep.subr.bf16.mxu0 %v2375_v25 }
0x13d6   :  { %2082 = vmatpush3.bf16.msra.mxu0 %v2785_v34 }
0x13d7   :  { %2083 = vmatprep.subr.bf16.mxu0 %v2375_v25 }
0x13da   :  { %2084 = vmatpush3.bf16.msra.mxu0 %v2789_v54 }
0x1490   :  { %v1266_v63 = vpop.f32.mrb[32].mxu0 }
0x1491   :  { %v1272_v0 = vadd.f32 %v1266_v63, %v942_v62  ;;  %v2047_v3 = vpop.f32.mrb[33].mxu0  ;;  %v1281_v16 = vadd.f32 %v2778_v51, %v1266_v63 }
0x1492   :  { %v1269_v8 = vpop.f32.mrb[34].mxu0 }
0x1493   :  { %v1606_v9 = vmul.f32 -1.442695, %v1272_v0  ;;  %v2048_v44 = vpop.f32.mrb[35].mxu0 }
0x1495   :  { %2225 = vpow2.f32 %v1606_v9 }
0x149f   :  { %v2226_v13 = vpop.eup %2225 }
0x14a0   :  { %v1276_v10 = vadd.f32 1.0, %v2226_v13  ;;  %v953_v13 = vadd.f32 %v2893_v1, %v2741_v33 }
0x14a2   :  { %2227 = vrcp.f32 %v1276_v10 }
0x14ac   :  { %v2228_v12 = vpop.eup %2227 }
0x14ad   :  { %1279 = vrot.lane.b32.xlu0 %v2228_v12, %s2368_s7 }
0x14b1   :  { %1287 = vrot.lane.b32.xlu0 %v2228_v12, %s2374_s13 }
0x151f   :  { %v1280_v17 = vpop.permute.xlu0 %1279 }
0x1520   :  { %v1282_v19 = vmul.f32 %v1281_v16, %v1280_v17 }
0x1522   :  { %v1283_v18 = vadd.f32 %v1282_v19, %v942_v62 }
0x1523   :  { %v1288_v35 = vpop.permute.xlu0 %1287 }
0x1524   :  { %2229 = vtanh.f32 %v1283_v18 }
0x152e   :  { %v2230_v20 = vpop.eup %2229 }
0x152f   :  { %1285 = vrot.lane.b32.xlu1 %v2230_v20, %s2368_s7 }
0x15a1   :  { %v1286_v21 = vpop.permute.xlu1 %1285 }
0x15a2   :  { %v1289_v22 = vsub.f32 %v1227_v61, %v1286_v21 }
0x15a4   :  { %v1290_v50 = vmul.f32 %v1289_v22, %v1288_v35 }
0x15a6   :  { %v1291_v11 = vadd.f32 %v1290_v50, %v1286_v21 }
0x15a8   :  { %v1608_v14 = vpack.c.bf16 %v1291_v11, %v1291_v11  ;;  %v1292_v6 = vsel %vm68_vm1, %v1291_v11, 0.0 }
0x15a9   :  { %1294 = vst [vmem:[#allocation10 + $0x20] sm:$0xff] %v1292_v6 }
0x15aa   :  { %2066 = vmatmul.mubr.msk.bf16.vlgmr.msra.gmra.mrb[24].mxu1 %vm2540_vm2, %v1608_v14 }
0x15ab   :  { %2090 = vmatpush3.bf16.msra.mxu1 %v2754_v49  ;;  %2105 = vmatprep.mubr.msk.bf16.mxu1 %vm2376_vm0, %v2375_v25  ;;  %v945_v49 = vadd.f32 %v2741_v33, %v2895_v2 }
0x15ac   :  { %2091 = vmatprep.subr.bf16.mxu1 %v2375_v25 }
0x15af   :  { %2092 = vmatpush3.bf16.msra.mxu1 %v2758_v26 }
0x15b0   :  { %2093 = vmatprep.subr.bf16.mxu1 %v2375_v25 }
0x15b3   :  { %2094 = vmatpush3.bf16.msra.mxu1 %v2763_v27 }
0x15b4   :  { %2095 = vmatprep.subr.bf16.mxu1 %v2375_v25 }
0x15b7   :  { %2096 = vmatpush3.bf16.msra.mxu1 %v2767_v28 }
0x15b8   :  { %2097 = vmatprep.subr.bf16.mxu1 %v2375_v25 }
0x15bb   :  { %2098 = vmatpush3.bf16.msra.mxu1 %v2771_v29 }
0x15bc   :  { %2099 = vmatprep.subr.bf16.mxu1 %v2375_v25 }
0x15bf   :  { %2100 = vmatpush3.bf16.msra.mxu1 %v2780_v52 }
0x15c0   :  { %2101 = vmatprep.subr.bf16.mxu1 %v2375_v25 }
0x15c3   :  { %2102 = vmatpush3.bf16.msra.mxu1 %v2785_v34 }
0x15c4   :  { %2103 = vmatprep.subr.bf16.mxu1 %v2375_v25 }
0x15c7   :  { %2104 = vmatpush3.bf16.msra.mxu1 %v2789_v54 }
0x167d   :  { %v1331_v26 = vpop.f32.mrb[24].mxu1 }
0x167e   :  { %v1337_v27 = vadd.f32 %v1331_v26, %v945_v49  ;;  %v2067_v28 = vpop.f32.mrb[25].mxu1  ;;  %v1346_v25 = vadd.f32 %v2778_v51, %v1331_v26 }
0x167f   :  { %v1334_v23 = vpop.f32.mrb[26].mxu1 }
0x1680   :  { %v1610_v29 = vmul.f32 -1.442695, %v1337_v27  ;;  %v2068_v32 = vpop.f32.mrb[27].mxu1 }
0x1682   :  { %2231 = vpow2.f32 %v1610_v29 }
0x168c   :  { %v2232_v4 = vpop.eup %2231 }
0x168d   :  { %v1341_v52 = vadd.f32 1.0, %v2232_v4 }
0x168f   :  { %2233 = vrcp.f32 %v1341_v52 }
0x1699   :  { %v2234_v37 = vpop.eup %2233 }
0x169a   :  { %1344 = vrot.lane.b32.xlu1 %v2234_v37, %s2368_s7 }
0x169e   :  { %1352 = vrot.lane.b32.xlu1 %v2234_v37, %s2374_s13 }
0x170c   :  { %v1345_v34 = vpop.permute.xlu1 %1344 }
0x170d   :  { %v1347_v54 = vmul.f32 %v1346_v25, %v1345_v34 }
0x170f   :  { %v1348_v2 = vadd.f32 %v1347_v54, %v945_v49 }
0x1710   :  { %v1353_v15 = vpop.permute.xlu1 %1352 }
0x1711   :  { %2235 = vtanh.f32 %v1348_v2 }
0x171b   :  { %v2236_v5 = vpop.eup %2235 }
0x171c   :  { %1350 = vrot.lane.b32.xlu0 %v2236_v5, %s2368_s7 }
0x178e   :  { %v1351_v40 = vpop.permute.xlu0 %1350 }
0x178f   :  { %v1354_v41 = vsub.f32 %v1292_v6, %v1351_v40 }
0x1791   :  { %v1355_v42 = vmul.f32 %v1354_v41, %v1353_v15 }
0x1793   :  { %v1356_v43 = vadd.f32 %v1355_v42, %v1351_v40 }
0x1795   :  { %v1612_v46 = vpack.c.bf16 %v1356_v43, %v1356_v43  ;;  %v1357_v47 = vsel %vm68_vm1, %v1356_v43, 0.0 }
0x1796   :  { %1359 = vst [vmem:[#allocation10 + $0x28] sm:$0xff] %v1357_v47 }
0x1797   :  { %2086 = vmatmul.mubr.msk.bf16.vlgmr.msra.gmra.mrb[36].mxu0 %vm2540_vm2, %v1612_v46 }
0x186a   :  { %v1396_v24 = vpop.f32.mrb[36].mxu0 }
0x186b   :  { %v1402_v30 = vadd.f32 %v1396_v24, %v950_v48  ;;  %v2087_v31 = vpop.f32.mrb[37].mxu0  ;;  %v1411_v57 = vadd.f32 %v2778_v51, %v1396_v24 }
0x186c   :  { %v1399_v53 = vpop.f32.mrb[38].mxu0 }
0x186d   :  { %v1614_v38 = vmul.f32 -1.442695, %v1402_v30  ;;  %v2088_v36 = vpop.f32.mrb[39].mxu0 }
0x186f   :  { %2237 = vpow2.f32 %v1614_v38 }
0x1879   :  { %v2238_v55 = vpop.eup %2237 }
0x187a   :  { %v1406_v7 = vadd.f32 1.0, %v2238_v55 }
0x187c   :  { %2239 = vrcp.f32 %v1406_v7 }
0x1886   :  { %v2240_v56 = vpop.eup %2239 }
0x1887   :  { %1409 = vrot.lane.b32.xlu0 %v2240_v56, %s2368_s7 }
0x188b   :  { %1417 = vrot.lane.b32.xlu0 %v2240_v56, %s2374_s13 }
0x18f9   :  { %v1410_v58 = vpop.permute.xlu0 %1409 }
0x18fa   :  { %v1412_v59 = vmul.f32 %v1411_v57, %v1410_v58 }
0x18fc   :  { %v1413_v60 = vadd.f32 %v1412_v59, %v950_v48 }
0x18fd   :  { %v1418_v0 = vpop.permute.xlu0 %1417 }
0x18fe   :  { %2241 = vtanh.f32 %v1413_v60 }
0x1908   :  { %v2242_v61 = vpop.eup %2241 }
0x1909   :  { %1415 = vrot.lane.b32.xlu1 %v2242_v61, %s2368_s7 }
0x197b   :  { %v1416_v62 = vpop.permute.xlu1 %1415 }
0x197c   :  { %v1419_v63 = vsub.f32 %v1357_v47, %v1416_v62 }
0x197e   :  { %v1420_v3 = vmul.f32 %v1419_v63, %v1418_v0 }
0x1980   :  { %v1421_v8 = vadd.f32 %v1420_v3, %v1416_v62 }
0x1982   :  { %v1616_v9 = vpack.c.bf16 %v1421_v8, %v1421_v8  ;;  %v1422_v44 = vsel %vm68_vm1, %v1421_v8, 0.0 }
0x1983   :  { %1424 = vst [vmem:[#allocation10 + $0x30] sm:$0xff] %v1422_v44 }
0x1984   :  { %2106 = vmatmul.mubr.msk.bf16.vlgmr.msra.gmra.mrb[28].mxu1 %vm2540_vm2, %v1616_v9 }
0x1a57   :  { %v1461_v10 = vpop.f32.mrb[28].mxu1 }
0x1a58   :  { %v1467_v12 = vadd.f32 %v1461_v10, %v953_v13  ;;  %v2107_v16 = vpop.f32.mrb[29].mxu1  ;;  %v1476_v45 = vadd.f32 %v2778_v51, %v1461_v10 }
0x1a59   :  { %v1464_v17 = vpop.f32.mrb[30].mxu1 }
0x1a5a   :  { %v1618_v19 = vmul.f32 -1.442695, %v1467_v12  ;;  %v2108_v18 = vpop.f32.mrb[31].mxu1 }
0x1a5c   :  { %2243 = vpow2.f32 %v1618_v19 }
0x1a66   :  { %v2244_v20 = vpop.eup %2243 }
0x1a67   :  { %v1471_v21 = vadd.f32 1.0, %v2244_v20 }
0x1a69   :  { %2245 = vrcp.f32 %v1471_v21 }
0x1a73   :  { %v2246_v22 = vpop.eup %2245 }
0x1a74   :  { %1474 = vrot.lane.b32.xlu1 %v2246_v22, %s2368_s7 }
0x1a78   :  { %1482 = vrot.lane.b32.xlu1 %v2246_v22, %s2374_s13 }
0x1ae6   :  { %v1475_v35 = vpop.permute.xlu1 %1474 }
0x1ae7   :  { %v1477_v50 = vmul.f32 %v1476_v45, %v1475_v35 }
0x1ae9   :  { %v1478_v33 = vadd.f32 %v1477_v50, %v953_v13 }
0x1aea   :  { %v1483_v6 = vpop.permute.xlu1 %1482 }
0x1aeb   :  { %2247 = vtanh.f32 %v1478_v33 }
0x1af5   :  { %v2248_v1 = vpop.eup %2247 }
0x1af6   :  { %1480 = vrot.lane.b32.xlu0 %v2248_v1, %s2368_s7 }
0x1b68   :  { %v1481_v11 = vpop.permute.xlu0 %1480 }
0x1b69   :  { %v1484_v14 = vsub.f32 %v1422_v44, %v1481_v11 }
0x1b6b   :  { %v1485_v49 = vmul.f32 %v1484_v14, %v1483_v6 }
0x1b6d   :  { %v1486_v26 = vadd.f32 %v1485_v49, %v1481_v11 }
0x1b6f   :  { %v1487_v51 = vsel %vm68_vm1, %v1486_v26, 0.0 }
0x1b70   :  { %1489 = vst [vmem:[#allocation10 + $0x38] sm:$0xff] %v1487_v51  ;;  %1490 = vst [vmem:[#allocation11] sm:$0xff] %v1487_v51 }
0x1b71   :  { %2326 = shalt.err (!%p2323_p0)
}
0x1b72   :  { %s2327_s25 = scalar_lea.hbm %s3039_s5, 1024 }
0x1b73   :  { %p2328_p1 = scmp.ne.s32.totalorder %s3039_s5, %s2327_s25  ;;  %p2331_p2 = scmp.lt.u32.totalorder %s2327_s25, %s3039_s5 }
0x1b75   :  { %p2333_p3 = pnand %p2331_p2, %p2328_p1 }
0x1b77   :  { %2336 = shalt.err (!%p2333_p3)
}
0x1b78   :  { %1502 = dma.vmem_to_hbm [thread:$0]  %s1497_s19, 1024, %s3039_s5, [#allocation6], %s2371_s1, %s2371_s1, %s2372_s21  }
0x1b79   :  { %s2337_s10 = scalar_lea.vmem %s1510_s22, 128  ;;  %p2342_p5 = scmp.lt.s32.totalorder %s1510_s22, %s1510_s22 }
0x1b7a   :  { %p2338_p4 = scmp.ne.s32.totalorder %s1510_s22, %s2337_s10  ;;  %p2343_p6 = scmp.lt.s32.totalorder %s2337_s10, %s2337_s10 }
0x1b7c   :  { %p2344_p7 = por %p2343_p6, %p2342_p5 }
0x1b7e   :  { %p2345_p8 = pnand %p2344_p7, %p2338_p4 }
0x1b80   :  { %2348 = shalt.err (!%p2345_p8)
}
0x1b81   :  { %s2349_s12 = scalar_lea.hbm %s3040_s6, 128 }
0x1b82   :  { %p2350_p9 = scmp.ne.s32.totalorder %s3040_s6, %s2349_s12  ;;  %p2353_p10 = scmp.lt.u32.totalorder %s2349_s12, %s3040_s6 }
0x1b84   :  { %p2355_p11 = pnand %p2353_p10, %p2350_p9 }
0x1b86   :  { %2358 = shalt.err (!%p2355_p11)
}
0x1b87   :  { %1512 = dma.vmem_to_hbm [thread:$0]  %s1510_s22, 128, %s3040_s6, [#allocation12]  }
0x1b88   :  { %2363 = dma.done.wait [#allocation6], 1024  }
0x1b89   :  { %2364 = vsyncadd [#allocation6], 4294966272 }
0x1b8a   :  { %2365 = dma.done.wait [#allocation12], 128  }
0x1b8b   :  { %2366 = vsyncadd [#allocation12], 4294967168 }
0x1b8c   :  { %1519 = vsyncpa [#allocation5], 1 }
0x1b8d   :  { %1520 = vsyncpa [#allocation8], 1 }
0x1b8e   :  { %1521 = vsyncpa [#allocation6], 1 }
0x1b8f   :  { %1522 = vsyncpa [#allocation12], 1 }

</bundles_post_ra>
